<compile_context>
chip_gen: v5e
topology: v5e:2x2
jax: 0.10.0
libtpu: 0.0.40
codegen_flags: <defaults>
</compile_context>

<pallas_src>
import numpy as np

import jax
import jax.numpy as jnp
from jax import lax
from jax.experimental import pallas as pl
from jax.experimental.pallas import tpu as pltpu

TAP_PAD = 128   # lane-aligned column block per 3x3 tap inside D_big


# ---------------------- folded stencil / downsample matrix ------------------- #

def _tap_selection_matrix(H, W):
    """(H*W, 9*TAP_PAD) 0/1 matrix folding shift + zero-pad boundary + stride-2
    subsample of a 3x3 / stride-2 / pad-1 depthwise conv:
      (x @ D)[m, k*TAP_PAD + ho*Wo + wo] = x[m, (2ho+ky-1)*W + (2wo+kx-1)]  (0 if OOB)
    with k = ky*3 + kx."""
    HW = H * W
    Ho, Wo = H // 2, W // 2
    d = np.zeros((HW, 9 * TAP_PAD), np.float32)
    for k in range(9):
        dy, dx = k // 3 - 1, k % 3 - 1
        for ho in range(Ho):
            h = 2 * ho + dy
            if not (0 <= h < H):
                continue
            for wo in range(Wo):
                w = 2 * wo + dx
                if 0 <= w < W:
                    d[h * W + w, k * TAP_PAD + ho * Wo + wo] = 1.0
    return jnp.asarray(d)


# ------------------------------- the kernel ---------------------------------- #

def _make_kernel(HoWo):
    def kernel(x_ref, dbig_ref, wdw_l_ref, wdw_r_ref, wcbr_ref, bcbr_ref,
               wpw_l_ref, bpw_l_ref, wpw_r_ref, bpw_r_ref, o_ref):
        x = x_ref[...]            # (M, HW)      M = Nb*C, channels on sublanes
        dbig = dbig_ref[...]      # (HW, 9*128)  0/1 selection matrix (shared)

        def dwsep(v, wdw_ref, wpw_ref, b_ref):
            # DW 3x3 stride-2 (+ folded BN scale): one MXU selection matmul, then
            # 9 VPU FMAs on lane-aligned (M, HoWo) tap slices.
            taps = jnp.dot(v, dbig, preferred_element_type=jnp.float32)   # (M, 9*128)
            wdw = wdw_ref[...]                                            # (M, 9)
            acc = wdw[:, 0:1] * taps[:, 0:HoWo]
            for k in range(1, 9):
                off = k * TAP_PAD
                acc = acc + wdw[:, k:k + 1] * taps[:, off:off + HoWo]
            # PW 1x1 (+ folded BN) as one small MXU dot, then bias + ReLU.
            z = jnp.dot(wpw_ref[...], acc, preferred_element_type=jnp.float32)
            return jnp.maximum(z + b_ref[...], 0.0)                       # (M, HoWo)

        # left branch: DWSepConv(x)
        left = dwsep(x, wdw_l_ref, wpw_l_ref, bpw_l_ref)

        # right branch: CBR(1x1) then DWSepConv.  Block-diagonal weights keep the
        # channel mixing inside each image of the sublane-stacked slab.
        r = jnp.maximum(jnp.dot(wcbr_ref[...], x, preferred_element_type=jnp.float32)
                        + bcbr_ref[...], 0.0)
        right = dwsep(r, wdw_r_ref, wpw_r_ref, bpw_r_ref)

        # concat + Shuffle(groups=2): output row (n, c) = [left | right] -> final
        # channels (2c, 2c+1) back to back.  One dense 2*HoWo(=128)-lane store.
        o_ref[...] = jnp.concatenate([left, right], axis=1)
    return kernel


# ----------------------------- parameter folding ----------------------------- #

def fold_params(params):
    """Fold eval-mode BatchNorms into conv weights (kernel keeps bias + ReLU only)."""
    C = params["cbr"]["w"].shape[0]

    def fold_branch(p):
        wdw_f = (p["wdw"] * p["dsc"][:, None, None]).reshape(C, 9)   # (C, 9)
        wpw_f = p["wpw"] * p["psc"][:, None]                          # (Cout, Cin)
        bias_f = p["pbi"] + wpw_f @ p["dbi"]                          # (C,)
        return wdw_f, wpw_f, bias_f

    wdw_l, wpw_l, b_l = fold_branch(params["left"])
    wdw_r, wpw_r, b_r = fold_branch(params["right"])
    return dict(
        wcbr=params["cbr"]["w"] * params["cbr"]["scale"][:, None],
        bcbr=params["cbr"]["bias"],
        wdw_l=wdw_l, wpw_l=wpw_l, b_l=b_l,
        wdw_r=wdw_r, wpw_r=wpw_r, b_r=b_r)


# ------------------------------ block-size choice ---------------------------- #

def _choose_block_n(N, C):
    """Images per grid step.  Prefer filling >= 8 sublanes (Nb*C >= 8), then keeping
    >= 2 grid steps (v7x megacore), then the largest block.  Keep the sublane dim
    (8,.)-tileable unless the block covers the whole batch."""
    cands = []
    for nb in range(1, N + 1):
        if N % nb:
            continue
        rows = nb * C
        if rows > 64:
            break
        if rows % 8 != 0 and nb != N:
            continue
        cands.append(nb)
    if not cands:
        return N
    return max(cands, key=lambda nb: ((nb * C) >= 8, (N // nb) >= 2, nb))


# --------------------------------- wrapper ------------------------------------ #

@jax.jit
def strided_shuffle_block(x_nchw, params):
    N, C, H, W = x_nchw.shape
    assert H % 2 == 0 and W % 2 == 0
    Ho, Wo = H // 2, W // 2
    HW, HoWo = H * W, Ho * Wo

    nb = _choose_block_n(N, C)        # images per grid step
    M = nb * C                        # sublane rows per step
    grid = (N // nb,)

    x2 = x_nchw.reshape(N * C, HW).astype(jnp.float32)   # contiguous view, no transpose
    dbig = _tap_selection_matrix(H, W)
    fp = fold_params(params)

    eye = jnp.eye(nb, dtype=jnp.float32)

    def bdiag(w):                     # per-image (C, C) -> block-diagonal (Nb*C, Nb*C)
        return jnp.kron(eye, w)

    def tile_rows(a):                 # per-channel rows -> sublane-stacked Nb copies
        return jnp.tile(a.reshape(C, -1), (nb, 1))

    def bcast(shape):                 # grid-invariant VMEM block
        return pl.BlockSpec(shape, lambda n: (0, 0))

    kernel = _make_kernel(HoWo)
    out = pl.pallas_call(
        kernel,
        out_shape=jax.ShapeDtypeStruct((N * C, 2 * HoWo), jnp.float32),
        grid=grid,
        in_specs=[
            pl.BlockSpec((M, HW), lambda n: (n, 0)),   # nb images / step, C on sublanes
            bcast((HW, 9 * TAP_PAD)),                  # folded tap/boundary/stride matrix
            bcast((M, 9)),                             # DW weights, left  (BN folded, tiled)
            bcast((M, 9)),                             # DW weights, right
            bcast((M, M)),                             # CBR 1x1 weight (block-diag)
            bcast((M, 1)),                             # CBR bias
            bcast((M, M)), bcast((M, 1)),              # left  PW weight / bias
            bcast((M, M)), bcast((M, 1)),              # right PW weight / bias
        ],
        out_specs=pl.BlockSpec((M, 2 * HoWo), lambda n: (n, 0)),
        compiler_params=pltpu.CompilerParams(dimension_semantics=("parallel",)),
    )(x2, dbig,
      tile_rows(fp["wdw_l"]), tile_rows(fp["wdw_r"]),
      bdiag(fp["wcbr"]), tile_rows(fp["bcbr"]),
      bdiag(fp["wpw_l"]), tile_rows(fp["b_l"]),
      bdiag(fp["wpw_r"]), tile_rows(fp["b_r"]))

    # (N*C, 2*Ho*Wo) is exactly the NCHW memory order of the groups=2 shuffled
    # (N, 2C, Ho, Wo): free reshape.
    return out.reshape(N, 2 * C, Ho, Wo)


# ----------------------------- parameter creation ----------------------------- #

def _bn_params(key, C, eps=1e-5):
    kg, kb, km, kv = jax.random.split(key, 4)
    gamma = jax.random.uniform(kg, (C,), jnp.float32, 0.5, 1.5)
    beta = 0.1 * jax.random.normal(kb, (C,), jnp.float32)
    mean = 0.1 * jax.random.normal(km, (C,), jnp.float32)
    var = jax.random.uniform(kv, (C,), jnp.float32, 0.5, 1.5)
    scale = gamma / jnp.sqrt(var + eps)
    bias = beta - mean * scale
    return scale, bias


def make_params(key, C):
    keys = jax.random.split(key, 10)

    def dwsep(k1, k2, k3, k4):
        wdw = 0.3 * jax.random.normal(k1, (C, 3, 3), jnp.float32)   # depthwise 3x3
        dsc, dbi = _bn_params(k2, C)
        wpw = 0.3 * jax.random.normal(k3, (C, C), jnp.float32)      # 1x1 as (Cout, Cin)
        psc, pbi = _bn_params(k4, C)
        return dict(wdw=wdw, dsc=dsc, dbi=dbi, wpw=wpw, psc=psc, pbi=pbi)

    w_cbr = 0.3 * jax.random.normal(keys[0], (C, C), jnp.float32)   # (Cout, Cin)
    csc, cbi = _bn_params(keys[1], C)
    return dict(cbr=dict(w=w_cbr, scale=csc, bias=cbi),
                right=dwsep(keys[2], keys[3], keys[4], keys[5]),
                left=dwsep(keys[6], keys[7], keys[8], keys[9]))


# ----------------------------- pure-JAX reference ----------------------------- #

def reference_forward(x_nchw, params):
    x = jnp.transpose(x_nchw, (0, 2, 3, 1)).astype(jnp.float32)     # NHWC
    N, H, W, C = x.shape
    hp = lax.Precision.HIGHEST

    def dwsep_ref(xin, p):
        rhs = jnp.transpose(p["wdw"], (1, 2, 0)).reshape(3, 3, 1, C)   # HWIO, groups=C
        y = lax.conv_general_dilated(xin, rhs, (2, 2), ((1, 1), (1, 1)),
                                     dimension_numbers=("NHWC", "HWIO", "NHWC"),
                                     feature_group_count=C, precision=hp)
        y = y * p["dsc"] + p["dbi"]
        z = jnp.einsum("nhwc,oc->nhwo", y, p["wpw"], precision=hp)
        return jnp.maximum(z * p["psc"] + p["pbi"], 0.0)

    cbr = jnp.maximum(
        jnp.einsum("nhwc,oc->nhwo", x, params["cbr"]["w"], precision=hp)
        * params["cbr"]["scale"] + params["cbr"]["bias"], 0.0)
    out_l = dwsep_ref(x, params["left"])
    out_r = dwsep_ref(cbr, params["right"])
    y = jnp.stack([out_l, out_r], axis=-1).reshape(N, H // 2, W // 2, 2 * C)
    return jnp.transpose(y, (0, 3, 1, 2))


# ----------------------------------- main -------------------------------------- #

if __name__ == "__main__":
    key = jax.random.PRNGKey(0)
    kx, kp = jax.random.split(key)
    N, C, H, W = 2, 4, 16, 16
    x = jax.random.normal(kx, (N, C, H, W), jnp.float32)
    params = make_params(kp, C)

    out = jax.block_until_ready(strided_shuffle_block(x, params))
    ref = reference_forward(x, params)

    assert out.shape == (N, 2 * C, H // 2, W // 2), out.shape
    max_err = float(jnp.max(jnp.abs(out - ref)))
    assert jnp.allclose(out, ref, atol=2e-2, rtol=2e-2), max_err
    print("KERNEL_OK")
</pallas_src>

<mosaic_0001>
module attributes {stable_mosaic.version = 11 : i64} {
  func.func @kernel(%arg0: i32, %arg1: memref<8x256xf32, #tpu.memory_space<vmem>>, %arg2: memref<256x1152xf32, #tpu.memory_space<vmem>>, %arg3: memref<8x9xf32, #tpu.memory_space<vmem>>, %arg4: memref<8x9xf32, #tpu.memory_space<vmem>>, %arg5: memref<8x8xf32, #tpu.memory_space<vmem>>, %arg6: memref<8x1xf32, #tpu.memory_space<vmem>>, %arg7: memref<8x8xf32, #tpu.memory_space<vmem>>, %arg8: memref<8x1xf32, #tpu.memory_space<vmem>>, %arg9: memref<8x8xf32, #tpu.memory_space<vmem>>, %arg10: memref<8x1xf32, #tpu.memory_space<vmem>>, %arg11: memref<8x128xf32, #tpu.memory_space<vmem>>) attributes {dimension_semantics = [#tpu.dimension_semantics<parallel>], iteration_bounds = array<i64: 1>, scalar_prefetch = 0 : i64, scratch_operands = 0 : i64, tpu.core_type = #tpu.core_type<tc>, window_params = [{transform_indices = @transform_0, window_bounds = array<i64: 8, 256>}, {pipeline_mode = #tpu.pipeline_mode<synchronous>, transform_indices = @transform_1, window_bounds = array<i64: 256, 1152>}, {pipeline_mode = #tpu.pipeline_mode<synchronous>, transform_indices = @transform_2, window_bounds = array<i64: 8, 9>}, {pipeline_mode = #tpu.pipeline_mode<synchronous>, transform_indices = @transform_3, window_bounds = array<i64: 8, 9>}, {pipeline_mode = #tpu.pipeline_mode<synchronous>, transform_indices = @transform_4, window_bounds = array<i64: 8, 8>}, {pipeline_mode = #tpu.pipeline_mode<synchronous>, transform_indices = @transform_5, window_bounds = array<i64: 8, 1>}, {pipeline_mode = #tpu.pipeline_mode<synchronous>, transform_indices = @transform_6, window_bounds = array<i64: 8, 8>}, {pipeline_mode = #tpu.pipeline_mode<synchronous>, transform_indices = @transform_7, window_bounds = array<i64: 8, 1>}, {pipeline_mode = #tpu.pipeline_mode<synchronous>, transform_indices = @transform_8, window_bounds = array<i64: 8, 8>}, {pipeline_mode = #tpu.pipeline_mode<synchronous>, transform_indices = @transform_9, window_bounds = array<i64: 8, 1>}, {transform_indices = @transform_10, window_bounds = array<i64: 8, 128>}]} {
    %c0 = arith.constant 0 : index
    %c0_0 = arith.constant 0 : index
    %0 = vector.load %arg1[%c0, %c0_0] : memref<8x256xf32, #tpu.memory_space<vmem>>, vector<8x256xf32>
    %c0_1 = arith.constant 0 : index
    %c0_2 = arith.constant 0 : index
    %1 = vector.load %arg2[%c0_1, %c0_2] : memref<256x1152xf32, #tpu.memory_space<vmem>>, vector<256x1152xf32>
    %cst = arith.constant dense<0.000000e+00> : vector<8x1152xf32>
    %2 = tpu.matmul %0, %1, %cst {dimension_numbers = #tpu.dot_dimension_numbers<[1], [0], [0], [1], [0, 0, 1, 1], [], []>} : vector<8x256xf32>, vector<256x1152xf32>, vector<8x1152xf32> -> vector<8x1152xf32>
    %c0_3 = arith.constant 0 : index
    %c0_4 = arith.constant 0 : index
    %3 = vector.load %arg3[%c0_3, %c0_4] : memref<8x9xf32, #tpu.memory_space<vmem>>, vector<8x9xf32>
    %4 = vector.extract_strided_slice %3 {offsets = [0, 0], sizes = [8, 1], strides = [1, 1]} : vector<8x9xf32> to vector<8x1xf32>
    %5 = vector.extract_strided_slice %2 {offsets = [0, 0], sizes = [8, 64], strides = [1, 1]} : vector<8x1152xf32> to vector<8x64xf32>
    %6 = vector.broadcast %4 : vector<8x1xf32> to vector<8x64xf32>
    %7 = arith.mulf %6, %5 : vector<8x64xf32>
    %8 = vector.extract_strided_slice %3 {offsets = [0, 1], sizes = [8, 1], strides = [1, 1]} : vector<8x9xf32> to vector<8x1xf32>
    %9 = vector.extract_strided_slice %2 {offsets = [0, 128], sizes = [8, 64], strides = [1, 1]} : vector<8x1152xf32> to vector<8x64xf32>
    %10 = vector.broadcast %8 : vector<8x1xf32> to vector<8x64xf32>
    %11 = arith.mulf %10, %9 : vector<8x64xf32>
    %12 = arith.addf %7, %11 : vector<8x64xf32>
    %13 = vector.extract_strided_slice %3 {offsets = [0, 2], sizes = [8, 1], strides = [1, 1]} : vector<8x9xf32> to vector<8x1xf32>
    %14 = vector.extract_strided_slice %2 {offsets = [0, 256], sizes = [8, 64], strides = [1, 1]} : vector<8x1152xf32> to vector<8x64xf32>
    %15 = vector.broadcast %13 : vector<8x1xf32> to vector<8x64xf32>
    %16 = arith.mulf %15, %14 : vector<8x64xf32>
    %17 = arith.addf %12, %16 : vector<8x64xf32>
    %18 = vector.extract_strided_slice %3 {offsets = [0, 3], sizes = [8, 1], strides = [1, 1]} : vector<8x9xf32> to vector<8x1xf32>
    %19 = vector.extract_strided_slice %2 {offsets = [0, 384], sizes = [8, 64], strides = [1, 1]} : vector<8x1152xf32> to vector<8x64xf32>
    %20 = vector.broadcast %18 : vector<8x1xf32> to vector<8x64xf32>
    %21 = arith.mulf %20, %19 : vector<8x64xf32>
    %22 = arith.addf %17, %21 : vector<8x64xf32>
    %23 = vector.extract_strided_slice %3 {offsets = [0, 4], sizes = [8, 1], strides = [1, 1]} : vector<8x9xf32> to vector<8x1xf32>
    %24 = vector.extract_strided_slice %2 {offsets = [0, 512], sizes = [8, 64], strides = [1, 1]} : vector<8x1152xf32> to vector<8x64xf32>
    %25 = vector.broadcast %23 : vector<8x1xf32> to vector<8x64xf32>
    %26 = arith.mulf %25, %24 : vector<8x64xf32>
    %27 = arith.addf %22, %26 : vector<8x64xf32>
    %28 = vector.extract_strided_slice %3 {offsets = [0, 5], sizes = [8, 1], strides = [1, 1]} : vector<8x9xf32> to vector<8x1xf32>
    %29 = vector.extract_strided_slice %2 {offsets = [0, 640], sizes = [8, 64], strides = [1, 1]} : vector<8x1152xf32> to vector<8x64xf32>
    %30 = vector.broadcast %28 : vector<8x1xf32> to vector<8x64xf32>
    %31 = arith.mulf %30, %29 : vector<8x64xf32>
    %32 = arith.addf %27, %31 : vector<8x64xf32>
    %33 = vector.extract_strided_slice %3 {offsets = [0, 6], sizes = [8, 1], strides = [1, 1]} : vector<8x9xf32> to vector<8x1xf32>
    %34 = vector.extract_strided_slice %2 {offsets = [0, 768], sizes = [8, 64], strides = [1, 1]} : vector<8x1152xf32> to vector<8x64xf32>
    %35 = vector.broadcast %33 : vector<8x1xf32> to vector<8x64xf32>
    %36 = arith.mulf %35, %34 : vector<8x64xf32>
    %37 = arith.addf %32, %36 : vector<8x64xf32>
    %38 = vector.extract_strided_slice %3 {offsets = [0, 7], sizes = [8, 1], strides = [1, 1]} : vector<8x9xf32> to vector<8x1xf32>
    %39 = vector.extract_strided_slice %2 {offsets = [0, 896], sizes = [8, 64], strides = [1, 1]} : vector<8x1152xf32> to vector<8x64xf32>
    %40 = vector.broadcast %38 : vector<8x1xf32> to vector<8x64xf32>
    %41 = arith.mulf %40, %39 : vector<8x64xf32>
    %42 = arith.addf %37, %41 : vector<8x64xf32>
    %43 = vector.extract_strided_slice %3 {offsets = [0, 8], sizes = [8, 1], strides = [1, 1]} : vector<8x9xf32> to vector<8x1xf32>
    %44 = vector.extract_strided_slice %2 {offsets = [0, 1024], sizes = [8, 64], strides = [1, 1]} : vector<8x1152xf32> to vector<8x64xf32>
    %45 = vector.broadcast %43 : vector<8x1xf32> to vector<8x64xf32>
    %46 = arith.mulf %45, %44 : vector<8x64xf32>
    %47 = arith.addf %42, %46 : vector<8x64xf32>
    %c0_5 = arith.constant 0 : index
    %c0_6 = arith.constant 0 : index
    %48 = vector.load %arg7[%c0_5, %c0_6] : memref<8x8xf32, #tpu.memory_space<vmem>>, vector<8x8xf32>
    %cst_7 = arith.constant dense<0.000000e+00> : vector<8x64xf32>
    %49 = tpu.matmul %48, %47, %cst_7 {dimension_numbers = #tpu.dot_dimension_numbers<[1], [0], [0], [1], [0, 0, 1, 1], [], []>} : vector<8x8xf32>, vector<8x64xf32>, vector<8x64xf32> -> vector<8x64xf32>
    %c0_8 = arith.constant 0 : index
    %c0_9 = arith.constant 0 : index
    %50 = vector.load %arg8[%c0_8, %c0_9] : memref<8x1xf32, #tpu.memory_space<vmem>>, vector<8x1xf32>
    %51 = vector.broadcast %50 : vector<8x1xf32> to vector<8x64xf32>
    %52 = arith.addf %49, %51 : vector<8x64xf32>
    %cst_10 = arith.constant 0.000000e+00 : f32
    %53 = vector.broadcast %cst_10 : f32 to vector<8x64xf32>
    %54 = arith.maximumf %52, %53 : vector<8x64xf32>
    %c0_11 = arith.constant 0 : index
    %c0_12 = arith.constant 0 : index
    %55 = vector.load %arg5[%c0_11, %c0_12] : memref<8x8xf32, #tpu.memory_space<vmem>>, vector<8x8xf32>
    %cst_13 = arith.constant dense<0.000000e+00> : vector<8x256xf32>
    %56 = tpu.matmul %55, %0, %cst_13 {dimension_numbers = #tpu.dot_dimension_numbers<[1], [0], [0], [1], [0, 0, 1, 1], [], []>} : vector<8x8xf32>, vector<8x256xf32>, vector<8x256xf32> -> vector<8x256xf32>
    %c0_14 = arith.constant 0 : index
    %c0_15 = arith.constant 0 : index
    %57 = vector.load %arg6[%c0_14, %c0_15] : memref<8x1xf32, #tpu.memory_space<vmem>>, vector<8x1xf32>
    %58 = vector.broadcast %57 : vector<8x1xf32> to vector<8x256xf32>
    %59 = arith.addf %56, %58 : vector<8x256xf32>
    %cst_16 = arith.constant 0.000000e+00 : f32
    %60 = vector.broadcast %cst_16 : f32 to vector<8x256xf32>
    %61 = arith.maximumf %59, %60 : vector<8x256xf32>
    %cst_17 = arith.constant dense<0.000000e+00> : vector<8x1152xf32>
    %62 = tpu.matmul %61, %1, %cst_17 {dimension_numbers = #tpu.dot_dimension_numbers<[1], [0], [0], [1], [0, 0, 1, 1], [], []>} : vector<8x256xf32>, vector<256x1152xf32>, vector<8x1152xf32> -> vector<8x1152xf32>
    %c0_18 = arith.constant 0 : index
    %c0_19 = arith.constant 0 : index
    %63 = vector.load %arg4[%c0_18, %c0_19] : memref<8x9xf32, #tpu.memory_space<vmem>>, vector<8x9xf32>
    %64 = vector.extract_strided_slice %63 {offsets = [0, 0], sizes = [8, 1], strides = [1, 1]} : vector<8x9xf32> to vector<8x1xf32>
    %65 = vector.extract_strided_slice %62 {offsets = [0, 0], sizes = [8, 64], strides = [1, 1]} : vector<8x1152xf32> to vector<8x64xf32>
    %66 = vector.broadcast %64 : vector<8x1xf32> to vector<8x64xf32>
    %67 = arith.mulf %66, %65 : vector<8x64xf32>
    %68 = vector.extract_strided_slice %63 {offsets = [0, 1], sizes = [8, 1], strides = [1, 1]} : vector<8x9xf32> to vector<8x1xf32>
    %69 = vector.extract_strided_slice %62 {offsets = [0, 128], sizes = [8, 64], strides = [1, 1]} : vector<8x1152xf32> to vector<8x64xf32>
    %70 = vector.broadcast %68 : vector<8x1xf32> to vector<8x64xf32>
    %71 = arith.mulf %70, %69 : vector<8x64xf32>
    %72 = arith.addf %67, %71 : vector<8x64xf32>
    %73 = vector.extract_strided_slice %63 {offsets = [0, 2], sizes = [8, 1], strides = [1, 1]} : vector<8x9xf32> to vector<8x1xf32>
    %74 = vector.extract_strided_slice %62 {offsets = [0, 256], sizes = [8, 64], strides = [1, 1]} : vector<8x1152xf32> to vector<8x64xf32>
    %75 = vector.broadcast %73 : vector<8x1xf32> to vector<8x64xf32>
    %76 = arith.mulf %75, %74 : vector<8x64xf32>
    %77 = arith.addf %72, %76 : vector<8x64xf32>
    %78 = vector.extract_strided_slice %63 {offsets = [0, 3], sizes = [8, 1], strides = [1, 1]} : vector<8x9xf32> to vector<8x1xf32>
    %79 = vector.extract_strided_slice %62 {offsets = [0, 384], sizes = [8, 64], strides = [1, 1]} : vector<8x1152xf32> to vector<8x64xf32>
    %80 = vector.broadcast %78 : vector<8x1xf32> to vector<8x64xf32>
    %81 = arith.mulf %80, %79 : vector<8x64xf32>
    %82 = arith.addf %77, %81 : vector<8x64xf32>
    %83 = vector.extract_strided_slice %63 {offsets = [0, 4], sizes = [8, 1], strides = [1, 1]} : vector<8x9xf32> to vector<8x1xf32>
    %84 = vector.extract_strided_slice %62 {offsets = [0, 512], sizes = [8, 64], strides = [1, 1]} : vector<8x1152xf32> to vector<8x64xf32>
    %85 = vector.broadcast %83 : vector<8x1xf32> to vector<8x64xf32>
    %86 = arith.mulf %85, %84 : vector<8x64xf32>
    %87 = arith.addf %82, %86 : vector<8x64xf32>
    %88 = vector.extract_strided_slice %63 {offsets = [0, 5], sizes = [8, 1], strides = [1, 1]} : vector<8x9xf32> to vector<8x1xf32>
    %89 = vector.extract_strided_slice %62 {offsets = [0, 640], sizes = [8, 64], strides = [1, 1]} : vector<8x1152xf32> to vector<8x64xf32>
    %90 = vector.broadcast %88 : vector<8x1xf32> to vector<8x64xf32>
    %91 = arith.mulf %90, %89 : vector<8x64xf32>
    %92 = arith.addf %87, %91 : vector<8x64xf32>
    %93 = vector.extract_strided_slice %63 {offsets = [0, 6], sizes = [8, 1], strides = [1, 1]} : vector<8x9xf32> to vector<8x1xf32>
    %94 = vector.extract_strided_slice %62 {offsets = [0, 768], sizes = [8, 64], strides = [1, 1]} : vector<8x1152xf32> to vector<8x64xf32>
    %95 = vector.broadcast %93 : vector<8x1xf32> to vector<8x64xf32>
    %96 = arith.mulf %95, %94 : vector<8x64xf32>
    %97 = arith.addf %92, %96 : vector<8x64xf32>
    %98 = vector.extract_strided_slice %63 {offsets = [0, 7], sizes = [8, 1], strides = [1, 1]} : vector<8x9xf32> to vector<8x1xf32>
    %99 = vector.extract_strided_slice %62 {offsets = [0, 896], sizes = [8, 64], strides = [1, 1]} : vector<8x1152xf32> to vector<8x64xf32>
    %100 = vector.broadcast %98 : vector<8x1xf32> to vector<8x64xf32>
    %101 = arith.mulf %100, %99 : vector<8x64xf32>
    %102 = arith.addf %97, %101 : vector<8x64xf32>
    %103 = vector.extract_strided_slice %63 {offsets = [0, 8], sizes = [8, 1], strides = [1, 1]} : vector<8x9xf32> to vector<8x1xf32>
    %104 = vector.extract_strided_slice %62 {offsets = [0, 1024], sizes = [8, 64], strides = [1, 1]} : vector<8x1152xf32> to vector<8x64xf32>
    %105 = vector.broadcast %103 : vector<8x1xf32> to vector<8x64xf32>
    %106 = arith.mulf %105, %104 : vector<8x64xf32>
    %107 = arith.addf %102, %106 : vector<8x64xf32>
    %c0_20 = arith.constant 0 : index
    %c0_21 = arith.constant 0 : index
    %108 = vector.load %arg9[%c0_20, %c0_21] : memref<8x8xf32, #tpu.memory_space<vmem>>, vector<8x8xf32>
    %cst_22 = arith.constant dense<0.000000e+00> : vector<8x64xf32>
    %109 = tpu.matmul %108, %107, %cst_22 {dimension_numbers = #tpu.dot_dimension_numbers<[1], [0], [0], [1], [0, 0, 1, 1], [], []>} : vector<8x8xf32>, vector<8x64xf32>, vector<8x64xf32> -> vector<8x64xf32>
    %c0_23 = arith.constant 0 : index
    %c0_24 = arith.constant 0 : index
    %110 = vector.load %arg10[%c0_23, %c0_24] : memref<8x1xf32, #tpu.memory_space<vmem>>, vector<8x1xf32>
    %111 = vector.broadcast %110 : vector<8x1xf32> to vector<8x64xf32>
    %112 = arith.addf %109, %111 : vector<8x64xf32>
    %cst_25 = arith.constant 0.000000e+00 : f32
    %113 = vector.broadcast %cst_25 : f32 to vector<8x64xf32>
    %114 = arith.maximumf %112, %113 : vector<8x64xf32>
    %115 = tpu.concatenate %54, %114 in 1 : vector<8x64xf32>, vector<8x64xf32> -> vector<8x128xf32>
    %c0_26 = arith.constant 0 : index
    %c0_27 = arith.constant 0 : index
    %116 = vector.load %arg11[%c0_26, %c0_27] : memref<8x128xf32, #tpu.memory_space<vmem>>, vector<8x128xf32>
    tpu.vector_store %arg11[%c0_26, %c0_27], %115 {strides = array<i32>} : memref<8x128xf32, #tpu.memory_space<vmem>>, vector<8x128xf32>,
    return
  }
  func.func @transform_0(%arg0: i32) -> (i32, i32) {
    %c0_i32 = arith.constant 0 : i32
    %c0_i32_0 = arith.constant 0 : i32
    return %arg0, %c0_i32 : i32, i32
  }
  func.func @transform_1(%arg0: i32) -> (i32, i32) {
    %c0_i32 = arith.constant 0 : i32
    %c0_i32_0 = arith.constant 0 : i32
    %c0_i32_1 = arith.constant 0 : i32
    return %c0_i32, %c0_i32_0 : i32, i32
  }
  func.func @transform_2(%arg0: i32) -> (i32, i32) {
    %c0_i32 = arith.constant 0 : i32
    %c0_i32_0 = arith.constant 0 : i32
    %c0_i32_1 = arith.constant 0 : i32
    return %c0_i32, %c0_i32_0 : i32, i32
  }
  func.func @transform_3(%arg0: i32) -> (i32, i32) {
    %c0_i32 = arith.constant 0 : i32
    %c0_i32_0 = arith.constant 0 : i32
    %c0_i32_1 = arith.constant 0 : i32
    return %c0_i32, %c0_i32_0 : i32, i32
  }
  func.func @transform_4(%arg0: i32) -> (i32, i32) {
    %c0_i32 = arith.constant 0 : i32
    %c0_i32_0 = arith.constant 0 : i32
    %c0_i32_1 = arith.constant 0 : i32
    return %c0_i32, %c0_i32_0 : i32, i32
  }
  func.func @transform_5(%arg0: i32) -> (i32, i32) {
    %c0_i32 = arith.constant 0 : i32
    %c0_i32_0 = arith.constant 0 : i32
    %c0_i32_1 = arith.constant 0 : i32
    return %c0_i32, %c0_i32_0 : i32, i32
  }
  func.func @transform_6(%arg0: i32) -> (i32, i32) {
    %c0_i32 = arith.constant 0 : i32
    %c0_i32_0 = arith.constant 0 : i32
    %c0_i32_1 = arith.constant 0 : i32
    return %c0_i32, %c0_i32_0 : i32, i32
  }
  func.func @transform_7(%arg0: i32) -> (i32, i32) {
    %c0_i32 = arith.constant 0 : i32
    %c0_i32_0 = arith.constant 0 : i32
    %c0_i32_1 = arith.constant 0 : i32
    return %c0_i32, %c0_i32_0 : i32, i32
  }
  func.func @transform_8(%arg0: i32) -> (i32, i32) {
    %c0_i32 = arith.constant 0 : i32
    %c0_i32_0 = arith.constant 0 : i32
    %c0_i32_1 = arith.constant 0 : i32
    return %c0_i32, %c0_i32_0 : i32, i32
  }
  func.func @transform_9(%arg0: i32) -> (i32, i32) {
    %c0_i32 = arith.constant 0 : i32
    %c0_i32_0 = arith.constant 0 : i32
    %c0_i32_1 = arith.constant 0 : i32
    return %c0_i32, %c0_i32_0 : i32, i32
  }
  func.func @transform_10(%arg0: i32) -> (i32, i32) {
    %c0_i32 = arith.constant 0 : i32
    %c0_i32_0 = arith.constant 0 : i32
    return %arg0, %c0_i32 : i32, i32
  }
}

</mosaic_0001>

<bundles_post_ra>
// kernel: strided_shuffle_block.1
= control target key start
LH: loop header
LB: loop body
LE: loop exit
PB: predicated region body
PF: predicated region fallthrough
CT: control target
= control target key end

     0   :  { %15 = vsyncpa [#allocation3], 0  ;;  %s1501_s16 = smov [#allocation2]   ;;  %s1502_s18 = smov 1152   ;;  %s2302_s0 = inlined_call_operand.vmem [shape: f32[8,256], index: 0, kind: input, shape index: {}]   ;;  %s2303_s1 = inlined_call_operand.hbm [shape: f32[256,1152], index: 1, kind: input, shape index: {}]   ;;  %s2304_s2 = inlined_call_operand.vmem [shape: f32[8,9], index: 2, kind: input, shape index: {}]   ;;  %s2305_s3 = inlined_call_operand.vmem [shape: f32[8,9], index: 3, kind: input, shape index: {}]   ;;  %s2306_s4 = inlined_call_operand.vmem [shape: f32[8,8], index: 4, kind: input, shape index: {}]   ;;  %s2307_s5 = inlined_call_operand.vmem [shape: f32[8,1], index: 5, kind: input, shape index: {}]   ;;  %s2308_s6 = inlined_call_operand.vmem [shape: f32[8,8], index: 6, kind: input, shape index: {}]   ;;  %s2309_s7 = inlined_call_operand.vmem [shape: f32[8,1], index: 7, kind: input, shape index: {}]   ;;  %s2310_s8 = inlined_call_operand.vmem [shape: f32[8,8], index: 8, kind: input, shape index: {}]   ;;  %s2311_s9 = inlined_call_operand.vmem [shape: f32[8,1], index: 9, kind: input, shape index: {}]   ;;  %s2312_s10 = inlined_call_operand.vmem [shape: f32[8,128], index: 10, kind: output, shape index: {}]  }
   0x1   :  { %s22_s15 = sshll.u32 %s2303_s1, 4  ;;  %s24_s17 = sshll.u32 %s1501_s16, 4  ;;  %s23_s15 = int_to_ptr.hbm [resolvable:$true] %s22_s15  ;;  %s25_s17 = int_to_ptr.vmem [resolvable:$true] %s24_s17 }
   0x2   :  { %s1503_s19 = smov 72  }
   0x3   :  { %30 = dma.hbm_to_vmem [thread:$0]  %s23_s15, 36864, %s25_s17, [#allocation3], %s1502_s18, %s1502_s18, %s1503_s19  }
   0x4   :  { %1499 = dma.done.wait [#allocation3], 36864  }
   0x5   :  { %1500 = vsyncadd [#allocation3], 4294930432  ;;  %v188_v0 = vld [vmem:[#allocation2 + $0x438] sm:$0xff]  ;;  %v189_v2 = vld [vmem:[#allocation2 + $0x440] sm:$0xff]  ;;  %vm763_vm0 = vcmask 64512   ;;  %s1513_s11 = smov 64  }
   0x6   :  { %v332_v1 = vld [vmem:[#allocation2 + $0x8b8] sm:$0xff]  ;;  %341 = vmatpush.msra.mxu0 %v188_v0  ;;  %v333_v3 = vld [vmem:[#allocation2 + $0x8c0] sm:$0xff]  ;;  %v179_v4 = vld [vmem:[#allocation2 + $0x3f0] sm:$0xff]  ;;  %381 = vmatpush.msra.mxu2 %v189_v2  ;;  %vm1290_vm1 = vcmask 523264  }
   0x7   :  { %361 = vmatpush.msra.mxu1 %v332_v1  ;;  %v323_v5 = vld [vmem:[#allocation2 + $0x870] sm:$0xff]  ;;  %401 = vmatpush.msra.mxu3 %v333_v3  ;;  %v180_v6 = vld [vmem:[#allocation2 + $0x3f8] sm:$0xff]  ;;  %v170_v8 = vld [vmem:[#allocation2 + $0x3a8] sm:$0xff] }
   0x8   :  { %v324_v7 = vld [vmem:[#allocation2 + $0x878] sm:$0xff]  ;;  %342 = vmatpush.msra.mxu0 %v179_v4  ;;  %v314_v9 = vld [vmem:[#allocation2 + $0x828] sm:$0xff]  ;;  %v171_v10 = vld [vmem:[#allocation2 + $0x3b0] sm:$0xff]  ;;  %382 = vmatpush.msra.mxu2 %v180_v6 }
   0x9   :  { %362 = vmatpush.msra.mxu1 %v323_v5  ;;  %v315_v11 = vld [vmem:[#allocation2 + $0x830] sm:$0xff]  ;;  %402 = vmatpush.msra.mxu3 %v324_v7  ;;  %v161_v12 = vld [vmem:[#allocation2 + $0x360] sm:$0xff]  ;;  %v162_v14 = vld [vmem:[#allocation2 + $0x368] sm:$0xff] }
   0xa   :  { %v305_v13 = vld [vmem:[#allocation2 + $0x7e0] sm:$0xff]  ;;  %343 = vmatpush.msra.mxu0 %v170_v8  ;;  %v306_v15 = vld [vmem:[#allocation2 + $0x7e8] sm:$0xff]  ;;  %383 = vmatpush.msra.mxu2 %v171_v10  ;;  %v152_v16 = vld [vmem:[#allocation2 + $0x318] sm:$0xff] }
   0xb   :  { %363 = vmatpush.msra.mxu1 %v314_v9  ;;  %403 = vmatpush.msra.mxu3 %v315_v11  ;;  %v296_v17 = vld [vmem:[#allocation2 + $0x798] sm:$0xff]  ;;  %v153_v18 = vld [vmem:[#allocation2 + $0x320] sm:$0xff]  ;;  %v143_v20 = vld [vmem:[#allocation2 + $0x2d0] sm:$0xff] }
   0xc   :  { %344 = vmatpush.msra.mxu0 %v161_v12  ;;  %v297_v19 = vld [vmem:[#allocation2 + $0x7a0] sm:$0xff]  ;;  %384 = vmatpush.msra.mxu2 %v162_v14  ;;  %v287_v21 = vld [vmem:[#allocation2 + $0x750] sm:$0xff]  ;;  %v144_v22 = vld [vmem:[#allocation2 + $0x2d8] sm:$0xff] }
   0xd   :  { %364 = vmatpush.msra.mxu1 %v305_v13  ;;  %404 = vmatpush.msra.mxu3 %v306_v15  ;;  %v288_v23 = vld [vmem:[#allocation2 + $0x758] sm:$0xff]  ;;  %v134_v24 = vld [vmem:[#allocation2 + $0x288] sm:$0xff]  ;;  %v135_v26 = vld [vmem:[#allocation2 + $0x290] sm:$0xff] }
   0xe   :  { %345 = vmatpush.msra.mxu0 %v152_v16  ;;  %385 = vmatpush.msra.mxu2 %v153_v18  ;;  %v278_v25 = vld [vmem:[#allocation2 + $0x708] sm:$0xff]  ;;  %v279_v27 = vld [vmem:[#allocation2 + $0x710] sm:$0xff]  ;;  %v125_v28 = vld [vmem:[#allocation2 + $0x240] sm:$0xff] }
   0xf   :  { %365 = vmatpush.msra.mxu1 %v296_v17  ;;  %405 = vmatpush.msra.mxu3 %v297_v19  ;;  %v269_v29 = vld [vmem:[#allocation2 + $0x6c0] sm:$0xff]  ;;  %v126_v30 = vld [vmem:[#allocation2 + $0x248] sm:$0xff]  ;;  %v116_v32 = vld [vmem:[#allocation2 + $0x1f8] sm:$0xff] }
  0x10   :  { %346 = vmatpush.msra.mxu0 %v143_v20  ;;  %386 = vmatpush.msra.mxu2 %v144_v22  ;;  %v270_v31 = vld [vmem:[#allocation2 + $0x6c8] sm:$0xff]  ;;  %v260_v33 = vld [vmem:[#allocation2 + $0x678] sm:$0xff]  ;;  %v117_v34 = vld [vmem:[#allocation2 + $0x200] sm:$0xff] }
  0x11   :  { %366 = vmatpush.msra.mxu1 %v287_v21  ;;  %406 = vmatpush.msra.mxu3 %v288_v23  ;;  %v261_v35 = vld [vmem:[#allocation2 + $0x680] sm:$0xff]  ;;  %v107_v36 = vld [vmem:[#allocation2 + $0x1b0] sm:$0xff]  ;;  %v108_v38 = vld [vmem:[#allocation2 + $0x1b8] sm:$0xff] }
  0x12   :  { %347 = vmatpush.msra.mxu0 %v134_v24  ;;  %387 = vmatpush.msra.mxu2 %v135_v26  ;;  %v251_v37 = vld [vmem:[#allocation2 + $0x630] sm:$0xff]  ;;  %v252_v39 = vld [vmem:[#allocation2 + $0x638] sm:$0xff]  ;;  %v98_v40 = vld [vmem:[#allocation2 + $0x168] sm:$0xff] }
  0x13   :  { %367 = vmatpush.msra.mxu1 %v278_v25  ;;  %407 = vmatpush.msra.mxu3 %v279_v27  ;;  %v242_v41 = vld [vmem:[#allocation2 + $0x5e8] sm:$0xff]  ;;  %v99_v42 = vld [vmem:[#allocation2 + $0x170] sm:$0xff]  ;;  %v89_v44 = vld [vmem:[#allocation2 + $0x120] sm:$0xff] }
  0x14   :  { %348 = vmatpush.msra.mxu0 %v125_v28  ;;  %388 = vmatpush.msra.mxu2 %v126_v30  ;;  %v243_v43 = vld [vmem:[#allocation2 + $0x5f0] sm:$0xff]  ;;  %v233_v45 = vld [vmem:[#allocation2 + $0x5a0] sm:$0xff]  ;;  %v90_v46 = vld [vmem:[#allocation2 + $0x128] sm:$0xff] }
  0x15   :  { %368 = vmatpush.msra.mxu1 %v269_v29  ;;  %408 = vmatpush.msra.mxu3 %v270_v31  ;;  %v234_v47 = vld [vmem:[#allocation2 + $0x5a8] sm:$0xff]  ;;  %v80_v48 = vld [vmem:[#allocation2 + $0xd8] sm:$0xff]  ;;  %v81_v50 = vld [vmem:[#allocation2 + $0xe0] sm:$0xff] }
  0x16   :  { %349 = vmatpush.msra.mxu0 %v116_v32  ;;  %389 = vmatpush.msra.mxu2 %v117_v34  ;;  %v224_v49 = vld [vmem:[#allocation2 + $0x558] sm:$0xff]  ;;  %v225_v51 = vld [vmem:[#allocation2 + $0x560] sm:$0xff]  ;;  %v71_v52 = vld [vmem:[#allocation2 + $0x90] sm:$0xff] }
  0x17   :  { %369 = vmatpush.msra.mxu1 %v260_v33  ;;  %409 = vmatpush.msra.mxu3 %v261_v35  ;;  %v215_v53 = vld [vmem:[#allocation2 + $0x510] sm:$0xff]  ;;  %v72_v54 = vld [vmem:[#allocation2 + $0x98] sm:$0xff]  ;;  %v62_v56 = vld [vmem:[#allocation2 + $0x48] sm:$0xff] }
  0x18   :  { %350 = vmatpush.msra.mxu0 %v107_v36  ;;  %390 = vmatpush.msra.mxu2 %v108_v38  ;;  %v216_v55 = vld [vmem:[#allocation2 + $0x518] sm:$0xff]  ;;  %v206_v57 = vld [vmem:[#allocation2 + $0x4c8] sm:$0xff]  ;;  %v63_v58 = vld [vmem:[#allocation2 + $0x50] sm:$0xff] }
  0x19   :  { %370 = vmatpush.msra.mxu1 %v251_v37  ;;  %410 = vmatpush.msra.mxu3 %v252_v39  ;;  %v207_v59 = vld [vmem:[#allocation2 + $0x4d0] sm:$0xff]  ;;  %v53_v60 = vld [vmem:[#allocation2] sm:$0xff]  ;;  %v54_v62 = vld [vmem:[#allocation2 + $0x8] sm:$0xff] }
  0x1a   :  { %351 = vmatpush.msra.mxu0 %v98_v40  ;;  %391 = vmatpush.msra.mxu2 %v99_v42  ;;  %v197_v61 = vld [vmem:[#allocation2 + $0x480] sm:$0xff]  ;;  %v198_v63 = vld [vmem:[#allocation2 + $0x488] sm:$0xff]  ;;  %v191_v2 = vld [vmem:[#allocation2 + $0x450] sm:$0xff] }
  0x1b   :  { %371 = vmatpush.msra.mxu1 %v242_v41  ;;  %411 = vmatpush.msra.mxu3 %v243_v43  ;;  %v190_v0 = vld [vmem:[#allocation2 + $0x448] sm:$0xff]  ;;  %v335_v3 = vld [vmem:[#allocation2 + $0x8d0] sm:$0xff]  ;;  %v181_v4 = vld [vmem:[#allocation2 + $0x400] sm:$0xff] }
  0x1c   :  { %352 = vmatpush.msra.mxu0 %v89_v44  ;;  %392 = vmatpush.msra.mxu2 %v90_v46  ;;  %v334_v1 = vld [vmem:[#allocation2 + $0x8c8] sm:$0xff]  ;;  %v325_v5 = vld [vmem:[#allocation2 + $0x880] sm:$0xff]  ;;  %v172_v8 = vld [vmem:[#allocation2 + $0x3b8] sm:$0xff] }
  0x1d   :  { %372 = vmatpush.msra.mxu1 %v233_v45  ;;  %412 = vmatpush.msra.mxu3 %v234_v47  ;;  %v182_v6 = vld [vmem:[#allocation2 + $0x408] sm:$0xff]  ;;  %v316_v9 = vld [vmem:[#allocation2 + $0x838] sm:$0xff]  ;;  %v173_v10 = vld [vmem:[#allocation2 + $0x3c0] sm:$0xff] }
  0x1e   :  { %353 = vmatpush.msra.mxu0 %v80_v48  ;;  %393 = vmatpush.msra.mxu2 %v81_v50  ;;  %v326_v7 = vld [vmem:[#allocation2 + $0x888] sm:$0xff]  ;;  %v317_v11 = vld [vmem:[#allocation2 + $0x840] sm:$0xff]  ;;  %v163_v12 = vld [vmem:[#allocation2 + $0x370] sm:$0xff] }
  0x1f   :  { %373 = vmatpush.msra.mxu1 %v224_v49  ;;  %413 = vmatpush.msra.mxu3 %v225_v51  ;;  %v307_v13 = vld [vmem:[#allocation2 + $0x7f0] sm:$0xff]  ;;  %v164_v14 = vld [vmem:[#allocation2 + $0x378] sm:$0xff]  ;;  %v154_v16 = vld [vmem:[#allocation2 + $0x328] sm:$0xff] }
  0x20   :  { %354 = vmatpush.msra.mxu0 %v71_v52  ;;  %394 = vmatpush.msra.mxu2 %v72_v54  ;;  %v308_v15 = vld [vmem:[#allocation2 + $0x7f8] sm:$0xff]  ;;  %v298_v17 = vld [vmem:[#allocation2 + $0x7a8] sm:$0xff]  ;;  %v155_v18 = vld [vmem:[#allocation2 + $0x330] sm:$0xff] }
  0x21   :  { %374 = vmatpush.msra.mxu1 %v215_v53  ;;  %414 = vmatpush.msra.mxu3 %v216_v55  ;;  %v299_v19 = vld [vmem:[#allocation2 + $0x7b0] sm:$0xff]  ;;  %v145_v20 = vld [vmem:[#allocation2 + $0x2e0] sm:$0xff]  ;;  %v146_v22 = vld [vmem:[#allocation2 + $0x2e8] sm:$0xff] }
  0x22   :  { %355 = vmatpush.msra.mxu0 %v62_v56  ;;  %395 = vmatpush.msra.mxu2 %v63_v58  ;;  %v289_v21 = vld [vmem:[#allocation2 + $0x760] sm:$0xff]  ;;  %v290_v23 = vld [vmem:[#allocation2 + $0x768] sm:$0xff]  ;;  %v136_v24 = vld [vmem:[#allocation2 + $0x298] sm:$0xff] }
  0x23   :  { %375 = vmatpush.msra.mxu1 %v206_v57  ;;  %415 = vmatpush.msra.mxu3 %v207_v59  ;;  %v280_v25 = vld [vmem:[#allocation2 + $0x718] sm:$0xff]  ;;  %v137_v26 = vld [vmem:[#allocation2 + $0x2a0] sm:$0xff]  ;;  %v127_v28 = vld [vmem:[#allocation2 + $0x250] sm:$0xff] }
  0x24   :  { %356 = vmatpush.msra.mxu0 %v53_v60  ;;  %396 = vmatpush.msra.mxu2 %v54_v62  ;;  %v281_v27 = vld [vmem:[#allocation2 + $0x720] sm:$0xff]  ;;  %v271_v29 = vld [vmem:[#allocation2 + $0x6d0] sm:$0xff]  ;;  %v128_v30 = vld [vmem:[#allocation2 + $0x258] sm:$0xff] }
  0x25   :  { %376 = vmatpush.msra.mxu1 %v197_v61  ;;  %416 = vmatpush.msra.mxu3 %v198_v63  ;;  %v272_v31 = vld [vmem:[#allocation2 + $0x6d8] sm:$0xff]  ;;  %v118_v32 = vld [vmem:[#allocation2 + $0x208] sm:$0xff]  ;;  %v119_v34 = vld [vmem:[#allocation2 + $0x210] sm:$0xff] }
  0x26   :  { %421 = vmatpush.msrb.mxu0 %v190_v0  ;;  %461 = vmatpush.msrb.mxu2 %v191_v2  ;;  %v262_v33 = vld [vmem:[#allocation2 + $0x688] sm:$0xff]  ;;  %v263_v35 = vld [vmem:[#allocation2 + $0x690] sm:$0xff]  ;;  %v1572_v36 = vld [vmem:[#allocation2 + $0x1c0] sm:$0xff] }
  0x27   :  { %441 = vmatpush.msrb.mxu1 %v334_v1  ;;  %481 = vmatpush.msrb.mxu3 %v335_v3  ;;  %v1574_v37 = vld [vmem:[#allocation2 + $0x640] sm:$0xff]  ;;  %v110_v38 = vld [vmem:[#allocation2 + $0x1c8] sm:$0xff]  ;;  %v1576_v40 = vld [vmem:[#allocation2 + $0x178] sm:$0xff] }
  0x28   :  { %422 = vmatpush.msrb.mxu0 %v181_v4  ;;  %462 = vmatpush.msrb.mxu2 %v182_v6  ;;  %v254_v39 = vld [vmem:[#allocation2 + $0x648] sm:$0xff]  ;;  %v1578_v41 = vld [vmem:[#allocation2 + $0x5f8] sm:$0xff]  ;;  %v101_v42 = vld [vmem:[#allocation2 + $0x180] sm:$0xff] }
  0x29   :  { %442 = vmatpush.msrb.mxu1 %v325_v5  ;;  %482 = vmatpush.msrb.mxu3 %v326_v7  ;;  %v245_v43 = vld [vmem:[#allocation2 + $0x600] sm:$0xff]  ;;  %v1582_v44 = vld [vmem:[#allocation2 + $0x130] sm:$0xff]  ;;  %v1588_v46 = vld [vmem:[#allocation2 + $0x138] sm:$0xff] }
  0x2a   :  { %423 = vmatpush.msrb.mxu0 %v172_v8  ;;  %463 = vmatpush.msrb.mxu2 %v173_v10  ;;  %v1584_v45 = vld [vmem:[#allocation2 + $0x5b0] sm:$0xff]  ;;  %v236_v47 = vld [vmem:[#allocation2 + $0x5b8] sm:$0xff]  ;;  %v1593_v48 = vld [vmem:[%s2302_s0] sm:$0xff] }
  0x2b   :  { %443 = vmatpush.msrb.mxu1 %v316_v9  ;;  %483 = vmatpush.msrb.mxu3 %v317_v11  ;;  %v1598_v49 = vld [vmem:[%s2302_s0 + $0x8] sm:$0xff]  ;;  %v1607_v52 = vld [vmem:[#allocation2 + $0xf0] sm:$0xff]  ;;  %v1613_v54 = vld [vmem:[#allocation2 + $0xa0] sm:$0xff] }
  0x2c   :  { %424 = vmatpush.msrb.mxu0 %v163_v12  ;;  %464 = vmatpush.msrb.mxu2 %v164_v14  ;;  %v1602_v50 = vld [vmem:[#allocation2 + $0xe8] sm:$0xff]  ;;  %v227_v53 = vld [vmem:[#allocation2 + $0x570] sm:$0xff]  ;;  %v1615_v55 = vld [vmem:[#allocation2 + $0x520] sm:$0xff] }
  0x2d   :  { %444 = vmatpush.msrb.mxu1 %v307_v13  ;;  %484 = vmatpush.msrb.mxu3 %v308_v15  ;;  %v1604_v51 = vld [vmem:[#allocation2 + $0x568] sm:$0xff]  ;;  %v1622_v58 = vld [vmem:[#allocation2 + $0x58] sm:$0xff]  ;;  %v1628_v60 = vld [vmem:[#allocation2 + $0x60] sm:$0xff]  ;;  %v2316_v15 = vmov 0  }
  0x2e   :  { %425 = vmatpush.msrb.mxu0 %v154_v16  ;;  %465 = vmatpush.msrb.mxu2 %v155_v18  ;;  %v1618_v56 = vld [vmem:[#allocation2 + $0xa8] sm:$0xff]  ;;  %v1624_v59 = vld [vmem:[#allocation2 + $0x4d8] sm:$0xff]  ;;  %v209_v61 = vld [vmem:[#allocation2 + $0x4e0] sm:$0xff] }
  0x2f   :  { %445 = vmatpush.msrb.mxu1 %v298_v17  ;;  %485 = vmatpush.msrb.mxu3 %v299_v19  ;;  %v218_v57 = vld [vmem:[#allocation2 + $0x528] sm:$0xff]  ;;  %v1631_v62 = vld [vmem:[#allocation2 + $0x10] sm:$0xff]  ;;  %v1637_v0 = vld [vmem:[#allocation2 + $0x18] sm:$0xff] }
  0x30   :  { %426 = vmatpush.msrb.mxu0 %v145_v20  ;;  %466 = vmatpush.msrb.mxu2 %v146_v22  ;;  %v1633_v63 = vld [vmem:[#allocation2 + $0x490] sm:$0xff]  ;;  %v200_v1 = vld [vmem:[#allocation2 + $0x498] sm:$0xff]  ;;  %v1647_v4 = vld [vmem:[#allocation2 + $0x460] sm:$0xff] }
  0x31   :  { %446 = vmatpush.msrb.mxu1 %v289_v21  ;;  %486 = vmatpush.msrb.mxu3 %v290_v23  ;;  %v1642_v2 = vld [vmem:[#allocation2 + $0x458] sm:$0xff]  ;;  %v337_v5 = vld [vmem:[#allocation2 + $0x8e0] sm:$0xff]  ;;  %v1653_v6 = vld [vmem:[#allocation2 + $0x410] sm:$0xff] }
  0x32   :  { %427 = vmatpush.msrb.mxu0 %v136_v24  ;;  %467 = vmatpush.msrb.mxu2 %v137_v26  ;;  %v1644_v3 = vld [vmem:[#allocation2 + $0x8d8] sm:$0xff]  ;;  %v1655_v7 = vld [vmem:[#allocation2 + $0x890] sm:$0xff]  ;;  %v1662_v10 = vld [vmem:[#allocation2 + $0x3c8] sm:$0xff] }
  0x33   :  { %447 = vmatpush.msrb.mxu1 %v280_v25  ;;  %487 = vmatpush.msrb.mxu3 %v281_v27  ;;  %v1658_v8 = vld [vmem:[#allocation2 + $0x418] sm:$0xff]  ;;  %v1669_v11 = vld [vmem:[%s2304_s2] sm:$0xff]  ;;  %v1671_v12 = vld [vmem:[#allocation2 + $0x848] sm:$0xff] }
  0x34   :  { %428 = vmatpush.msrb.mxu0 %v127_v28  ;;  %468 = vmatpush.msrb.mxu2 %v128_v30  ;;  %v328_v9 = vld [vmem:[#allocation2 + $0x898] sm:$0xff]  ;;  %v1674_v13 = vld [vmem:[#allocation2 + $0x3d0] sm:$0xff]  ;;  %v1678_v16 = vld [vmem:[#allocation2 + $0x380] sm:$0xff]  ;;  %v2313_v28 = vmov 2  }
  0x35   :  { %448 = vmatpush.msrb.mxu1 %v271_v29  ;;  %488 = vmatpush.msrb.mxu3 %v272_v31  ;;  %v319_v14 = vld [vmem:[#allocation2 + $0x850] sm:$0xff]  ;;  %v1680_v17 = vld [vmem:[#allocation2 + $0x800] sm:$0xff]  ;;  %v1684_v18 = vld [vmem:[#allocation2 + $0x388] sm:$0xff] }
  0x36   :  { %429 = vmatpush.msrb.mxu0 %v118_v32  ;;  %469 = vmatpush.msrb.mxu2 %v119_v34  ;;  %v310_v19 = vld [vmem:[#allocation2 + $0x808] sm:$0xff]  ;;  %v1687_v20 = vld [vmem:[#allocation2 + $0x338] sm:$0xff]  ;;  %v1693_v22 = vld [vmem:[#allocation2 + $0x340] sm:$0xff] }
  0x37   :  { %449 = vmatpush.msrb.mxu1 %v262_v33  ;;  %489 = vmatpush.msrb.mxu3 %v263_v35  ;;  %v1689_v21 = vld [vmem:[#allocation2 + $0x7b8] sm:$0xff]  ;;  %v301_v23 = vld [vmem:[#allocation2 + $0x7c0] sm:$0xff]  ;;  %v1696_v24 = vld [vmem:[#allocation2 + $0x2f0] sm:$0xff]  ;;  %v2315_v33 = vmov 1  }
  0x38   :  { %430 = vmatpush.msrb.mxu0 %v1572_v36  ;;  %470 = vmatpush.msrb.mxu2 %v110_v38  ;;  %v1700_v25 = vld [vmem:[#allocation2 + $0x770] sm:$0xff]  ;;  %v1703_v26 = vld [vmem:[#allocation2 + $0x2f8] sm:$0xff]  ;;  %v1707_v29 = vld [vmem:[#allocation2 + $0x2a8] sm:$0xff] }
  0x39   :  { %450 = vmatpush.msrb.mxu1 %v1574_v37  ;;  %490 = vmatpush.msrb.mxu3 %v254_v39  ;;  %v292_v27 = vld [vmem:[#allocation2 + $0x778] sm:$0xff]  ;;  %v1711_v30 = vld [vmem:[#allocation2 + $0x728] sm:$0xff]  ;;  %v1713_v31 = vld [vmem:[#allocation2 + $0x2b0] sm:$0xff] }
  0x3a   :  { %431 = vmatpush.msrb.mxu0 %v1576_v40  ;;  %471 = vmatpush.msrb.mxu2 %v101_v42  ;;  %v283_v32 = vld [vmem:[#allocation2 + $0x730] sm:$0xff]  ;;  %v1718_v34 = vld [vmem:[#allocation2 + $0x260] sm:$0xff]  ;;  %v1724_v38 = vld [vmem:[#allocation2 + $0x268] sm:$0xff] }
  0x3b   :  { %451 = vmatpush.msrb.mxu1 %v1578_v41  ;;  %491 = vmatpush.msrb.mxu3 %v245_v43  ;;  %v1720_v35 = vld [vmem:[#allocation2 + $0x6e0] sm:$0xff]  ;;  %v274_v39 = vld [vmem:[#allocation2 + $0x6e8] sm:$0xff]  ;;  %v1727_v42 = vld [vmem:[#allocation2 + $0x218] sm:$0xff] }
  0x3c   :  { %432 = vmatpush.msrb.mxu0 %v1582_v44  ;;  %472 = vmatpush.msrb.mxu2 %v1588_v46  ;;  %v1729_v43 = vld [vmem:[#allocation2 + $0x698] sm:$0xff] }
  0x3d   :  { %452 = vmatpush.msrb.mxu1 %v1584_v45  ;;  %492 = vmatpush.msrb.mxu3 %v236_v47  ;;  %v1733_v47 = vld [vmem:[#allocation2 + $0x220] sm:$0xff] }
  0x3e   :  { %397 = vmatmul.f32.vlgmr.msra.gmra.mxu2 %v1593_v48  ;;  %417 = vmatmul.f32.vlgmr.msra.gmra.mxu3 %v1598_v49 }
  0x3f   :  { %433 = vmatpush.msrb.mxu0 %v1602_v50  ;;  %453 = vmatpush.msrb.mxu1 %v1604_v51 }
  0x40   :  { %473 = vmatpush.msrb.mxu2 %v1607_v52  ;;  %493 = vmatpush.msrb.mxu3 %v227_v53  ;;  %v265_v53 = vld [vmem:[#allocation2 + $0x6a0] sm:$0xff] }
  0x41   :  { %357 = vmatmul.f32.vlgmr.msra.gmra.mxu0 %v1593_v48  ;;  %377 = vmatmul.f32.vlgmr.msra.gmra.mxu1 %v1598_v49 }
  0x42   :  { %434 = vmatpush.msrb.mxu0 %v1613_v54  ;;  %454 = vmatpush.msrb.mxu1 %v1615_v55 }
  0x43   :  { %474 = vmatpush.msrb.mxu2 %v1618_v56  ;;  %494 = vmatpush.msrb.mxu3 %v218_v57  ;;  %v1736_v57 = vld [vmem:[#allocation2 + $0x1d0] sm:$0xff] }
  0x44   :  { %435 = vmatpush.msrb.mxu0 %v1622_v58  ;;  %455 = vmatpush.msrb.mxu1 %v1624_v59 }
  0x45   :  { %475 = vmatpush.msrb.mxu2 %v1628_v60  ;;  %495 = vmatpush.msrb.mxu3 %v209_v61  ;;  %v1740_v61 = vld [vmem:[#allocation2 + $0x650] sm:$0xff] }
  0x46   :  { %436 = vmatpush.msrb.mxu0 %v1631_v62  ;;  %456 = vmatpush.msrb.mxu1 %v1633_v63 }
  0x47   :  { %476 = vmatpush.msrb.mxu2 %v1637_v0  ;;  %496 = vmatpush.msrb.mxu3 %v200_v1  ;;  %v1742_v1 = vld [vmem:[#allocation2 + $0x1d8] sm:$0xff] }
  0x48   :  { %477 = vmatmul.f32.vlgmr.msrb.gmra.mxu2 %v1593_v48  ;;  %497 = vmatmul.f32.vlgmr.msrb.gmra.mxu3 %v1598_v49 }
  0x49   :  { %501 = vmatpush.msra.mxu0 %v1642_v2  ;;  %521 = vmatpush.msra.mxu1 %v1644_v3 }
  0x4a   :  { %541 = vmatpush.msra.mxu2 %v1647_v4  ;;  %561 = vmatpush.msra.mxu3 %v337_v5  ;;  %v256_v5 = vld [vmem:[#allocation2 + $0x658] sm:$0xff] }
  0x4b   :  { %437 = vmatmul.f32.vlgmr.msrb.gmra.mxu0 %v1593_v48  ;;  %457 = vmatmul.f32.vlgmr.msrb.gmra.mxu1 %v1598_v49 }
  0x4c   :  { %502 = vmatpush.msra.mxu0 %v1653_v6  ;;  %522 = vmatpush.msra.mxu1 %v1655_v7 }
  0x4d   :  { %542 = vmatpush.msra.mxu2 %v1658_v8  ;;  %562 = vmatpush.msra.mxu3 %v328_v9  ;;  %v2314_v9 = vmov 3  }
  0x4e   :  { %1315 = vset.pattern.permute.xlu0 %v2316_v15  ;;  %503 = vmatpush.msra.mxu0 %v1662_v10  ;;  %v229_v15 = vld [vmem:[#allocation2 + $0x580] sm:$0xff] }
  0x4f   :  { %704 = vperm.xlu0 %1315, %v1669_v11   ;;  %523 = vmatpush.msra.mxu1 %v1671_v12 }
  0x50   :  { %543 = vmatpush.msra.mxu2 %v1674_v13  ;;  %563 = vmatpush.msra.mxu3 %v319_v14  ;;  %v1747_v14 = vld [vmem:[#allocation2 + $0x188] sm:$0xff] }
  0x51   :  { %504 = vmatpush.msra.mxu0 %v1678_v16  ;;  %524 = vmatpush.msra.mxu1 %v1680_v17  ;;  %2422 = vst [vmem:[#allocation5_spill] sm:$0xff] %v1747_v14 }
  0x52   :  { %544 = vmatpush.msra.mxu2 %v1684_v18  ;;  %564 = vmatpush.msra.mxu3 %v310_v19  ;;  %v1749_v19 = vld [vmem:[#allocation2 + $0x608] sm:$0xff] }
  0x53   :  { %505 = vmatpush.msra.mxu0 %v1687_v20  ;;  %525 = vmatpush.msra.mxu1 %v1689_v21  ;;  %2423 = vst [vmem:[#allocation6_spill] sm:$0xff] %v1749_v19 }
  0x54   :  { %545 = vmatpush.msra.mxu2 %v1693_v22  ;;  %565 = vmatpush.msra.mxu3 %v301_v23  ;;  %v1753_v23 = vld [vmem:[#allocation2 + $0x190] sm:$0xff] }
  0x55   :  { %1317 = vset.pattern.permute.xlu1 %v2313_v28  ;;  %506 = vmatpush.msra.mxu0 %v1696_v24  ;;  %2424 = vst [vmem:[#allocation7_spill] sm:$0xff] %v1753_v23  ;;  %v238_v28 = vld [vmem:[#allocation2 + $0x5c8] sm:$0xff] }
  0x56   :  { %715 = vperm.xlu1 %1317, %v1669_v11   ;;  %526 = vmatpush.msra.mxu1 %v1700_v25 }
  0x57   :  { %546 = vmatpush.msra.mxu2 %v1703_v26  ;;  %566 = vmatpush.msra.mxu3 %v292_v27  ;;  %v247_v27 = vld [vmem:[#allocation2 + $0x610] sm:$0xff] }
  0x58   :  { %1316 = vset.pattern.permute.xlu0 %v2315_v33  ;;  %507 = vmatpush.msra.mxu0 %v1707_v29  ;;  %v1767_v33 = vld [vmem:[#allocation2 + $0x578] sm:$0xff] }
  0x59   :  { %527 = vmatpush.msra.mxu1 %v1711_v30  ;;  %547 = vmatpush.msra.mxu2 %v1713_v31  ;;  %2429 = vst [vmem:[#allocation12_spill] sm:$0xff] %v1767_v33 }
  0x5a   :  { %567 = vmatpush.msra.mxu3 %v283_v32  ;;  %709 = vperm.xlu0 %1316, %v1669_v11   ;;  %v1756_v32 = vld [vmem:[#allocation2 + $0x140] sm:$0xff] }
  0x5b   :  { %508 = vmatpush.msra.mxu0 %v1718_v34  ;;  %528 = vmatpush.msra.mxu1 %v1720_v35  ;;  %2425 = vst [vmem:[#allocation8_spill] sm:$0xff] %v1756_v32 }
  0x5c   :  { %548 = vmatpush.msra.mxu2 %v1724_v38  ;;  %568 = vmatpush.msra.mxu3 %v274_v39  ;;  %v1758_v39 = vld [vmem:[#allocation2 + $0x5c0] sm:$0xff] }
  0x5d   :  { %509 = vmatpush.msra.mxu0 %v1727_v42  ;;  %529 = vmatpush.msra.mxu1 %v1729_v43  ;;  %2426 = vst [vmem:[#allocation9_spill] sm:$0xff] %v1758_v39 }
  0x5e   :  { %549 = vmatpush.msra.mxu2 %v1733_v47  ;;  %569 = vmatpush.msra.mxu3 %v265_v53  ;;  %v1762_v53 = vld [vmem:[#allocation2 + $0x148] sm:$0xff] }
  0x5f   :  { %1318 = vset.pattern.permute.xlu1 %v2314_v9  ;;  %510 = vmatpush.msra.mxu0 %v1736_v57  ;;  %2427 = vst [vmem:[#allocation10_spill] sm:$0xff] %v1762_v53  ;;  %v1765_v9 = vld [vmem:[#allocation2 + $0xf8] sm:$0xff] }
  0x60   :  { %530 = vmatpush.msra.mxu1 %v1740_v61  ;;  %550 = vmatpush.msra.mxu2 %v1742_v1  ;;  %2428 = vst [vmem:[#allocation11_spill] sm:$0xff] %v1765_v9 }
  0x61   :  { %570 = vmatpush.msra.mxu3 %v256_v5  ;;  %721 = vperm.xlu1 %1318, %v1669_v11   ;;  %v1771_v5 = vld [vmem:[#allocation2 + $0x100] sm:$0xff] }
  0x62   :  { %511 = vmatpush.msra.mxu0 %v1747_v14  ;;  %531 = vmatpush.msra.mxu1 %v1749_v19  ;;  %2430 = vst [vmem:[#allocation13_spill] sm:$0xff] %v1771_v5  ;;  %v1774_v19 = vld [vmem:[#allocation2 + $0xb0] sm:$0xff] }
  0x63   :  { %551 = vmatpush.msra.mxu2 %v1753_v23  ;;  %571 = vmatpush.msra.mxu3 %v247_v27  ;;  %2431 = vst [vmem:[#allocation14_spill] sm:$0xff] %v1774_v19  ;;  %v1776_v14 = vld [vmem:[#allocation2 + $0x530] sm:$0xff]  ;;  %v1780_v27 = vld [vmem:[#allocation2 + $0xb8] sm:$0xff] }
  0x64   :  { %512 = vmatpush.msra.mxu0 %v1756_v32  ;;  %532 = vmatpush.msra.mxu1 %v1758_v39  ;;  %2432 = vst [vmem:[#allocation15_spill] sm:$0xff] %v1776_v14  ;;  %v220_v23 = vld [vmem:[#allocation2 + $0x538] sm:$0xff]  ;;  %v1783_v39 = vld [vmem:[#allocation2 + $0x68] sm:$0xff] }
  0x65   :  { %552 = vmatpush.msra.mxu2 %v1762_v53  ;;  %572 = vmatpush.msra.mxu3 %v238_v28  ;;  %2433 = vst [vmem:[#allocation16_spill] sm:$0xff] %v1780_v27  ;;  %v1785_v32 = vld [vmem:[#allocation2 + $0x4e8] sm:$0xff]  ;;  %v1789_v28 = vld [vmem:[#allocation2 + $0x70] sm:$0xff] }
  0x66   :  { %513 = vmatpush.msra.mxu0 %v1765_v9  ;;  %533 = vmatpush.msra.mxu1 %v1767_v33  ;;  %2434 = vst [vmem:[#allocation17_spill] sm:$0xff] %v1783_v39  ;;  %v211_v53 = vld [vmem:[#allocation2 + $0x4f0] sm:$0xff]  ;;  %v1792_v33 = vld [vmem:[#allocation2 + $0x20] sm:$0xff] }
  0x67   :  { %553 = vmatpush.msra.mxu2 %v1771_v5  ;;  %573 = vmatpush.msra.mxu3 %v229_v15  ;;  %2435 = vst [vmem:[#allocation18_spill] sm:$0xff] %v1785_v32  ;;  %v1794_v9 = vld [vmem:[#allocation2 + $0x4a0] sm:$0xff]  ;;  %v1798_v15 = vld [vmem:[#allocation2 + $0x28] sm:$0xff] }
  0x68   :  { %514 = vmatpush.msra.mxu0 %v1774_v19  ;;  %534 = vmatpush.msra.mxu1 %v1776_v14  ;;  %2436 = vst [vmem:[#allocation19_spill] sm:$0xff] %v1789_v28  ;;  %v202_v5 = vld [vmem:[#allocation2 + $0x4a8] sm:$0xff]  ;;  %v1829_v14 = vld [vmem:[#allocation2 + $0x3e0] sm:$0xff] }
  0x69   :  { %554 = vmatpush.msra.mxu2 %v1780_v27  ;;  %574 = vmatpush.msra.mxu3 %v220_v23  ;;  %2437 = vst [vmem:[#allocation20_spill] sm:$0xff] %v1792_v33  ;;  %v1804_v23 = vld [vmem:[#allocation2 + $0x468] sm:$0xff]  ;;  %v321_v19 = vld [vmem:[#allocation2 + $0x860] sm:$0xff] }
  0x6a   :  { %2438 = vst [vmem:[#allocation21_spill] sm:$0xff] %v1794_v9  ;;  %515 = vmatpush.msra.mxu0 %v1783_v39  ;;  %535 = vmatpush.msra.mxu1 %v1785_v32  ;;  %v1806_v27 = vld [vmem:[#allocation2 + $0x8e8] sm:$0xff]  ;;  %v1810_v32 = vld [vmem:[#allocation2 + $0x470] sm:$0xff] }
  0x6b   :  { %2439 = vst [vmem:[#allocation22_spill] sm:$0xff] %v1798_v15  ;;  %555 = vmatpush.msra.mxu2 %v1789_v28  ;;  %575 = vmatpush.msra.mxu3 %v211_v53  ;;  %v339_v39 = vld [vmem:[#allocation2 + $0x8f0] sm:$0xff]  ;;  %v1814_v53 = vld [vmem:[#allocation2 + $0x420] sm:$0xff]  ;;  %v1825_v28 = vld [vmem:[#allocation2 + $0x858] sm:$0xff] }
  0x6c   :  { %516 = vmatpush.msra.mxu0 %v1792_v33  ;;  %536 = vmatpush.msra.mxu1 %v1794_v9  ;;  %2440 = vst [vmem:[#allocation23_spill] sm:$0xff] %v1804_v23  ;;  %v1816_v9 = vld [vmem:[#allocation2 + $0x8a0] sm:$0xff]  ;;  %v1823_v33 = vld [vmem:[#allocation2 + $0x3d8] sm:$0xff] }
  0x6d   :  { %556 = vmatpush.msra.mxu2 %v1798_v15  ;;  %576 = vmatpush.msra.mxu3 %v202_v5  ;;  %2441 = vst [vmem:[#allocation24_spill] sm:$0xff] %v1806_v27  ;;  %v1820_v5 = vld [vmem:[#allocation2 + $0x428] sm:$0xff] }
  0x6e   :  { %517 = vmatmul.f32.vlgmr.msra.gmra.mxu0 %v1593_v48  ;;  %537 = vmatmul.f32.vlgmr.msra.gmra.mxu1 %v1598_v49  ;;  %2442 = vst [vmem:[#allocation25_spill] sm:$0xff] %v1810_v32  ;;  %v330_v15 = vld [vmem:[#allocation2 + $0x8a8] sm:$0xff] }
  0x6f   :  { %557 = vmatmul.f32.vlgmr.msra.gmra.mxu2 %v1593_v48  ;;  %577 = vmatmul.f32.vlgmr.msra.gmra.mxu3 %v1598_v49  ;;  %2443 = vst [vmem:[#allocation26_spill] sm:$0xff] %v1814_v53 }
  0x70   :  { %2444 = vst [vmem:[#allocation27_spill] sm:$0xff] %v1816_v9  ;;  %581 = vmatpush.msrb.mxu0 %v1804_v23  ;;  %601 = vmatpush.msrb.mxu1 %v1806_v27  ;;  %v1832_v27 = vld [vmem:[#allocation2 + $0x390] sm:$0xff] }
  0x71   :  { %2445 = vst [vmem:[#allocation28_spill] sm:$0xff] %v1820_v5  ;;  %621 = vmatpush.msrb.mxu2 %v1810_v32  ;;  %641 = vmatpush.msrb.mxu3 %v339_v39  ;;  %v1834_v23 = vld [vmem:[#allocation2 + $0x810] sm:$0xff]  ;;  %v1838_v39 = vld [vmem:[#allocation2 + $0x398] sm:$0xff] }
  0x72   :  { %2446 = vst [vmem:[#allocation29_spill] sm:$0xff] %v1823_v33  ;;  %582 = vmatpush.msrb.mxu0 %v1814_v53  ;;  %602 = vmatpush.msrb.mxu1 %v1816_v9  ;;  %v312_v32 = vld [vmem:[#allocation2 + $0x818] sm:$0xff]  ;;  %v1841_v9 = vld [vmem:[#allocation2 + $0x348] sm:$0xff] }
  0x73   :  { %2447 = vst [vmem:[#allocation30_spill] sm:$0xff] %v1825_v28  ;;  %622 = vmatpush.msrb.mxu2 %v1820_v5  ;;  %642 = vmatpush.msrb.mxu3 %v330_v15  ;;  %v1843_v53 = vld [vmem:[#allocation2 + $0x7c8] sm:$0xff]  ;;  %v1847_v15 = vld [vmem:[#allocation2 + $0x350] sm:$0xff] }
  0x74   :  { %2448 = vst [vmem:[#allocation31_spill] sm:$0xff] %v1829_v14  ;;  %583 = vmatpush.msrb.mxu0 %v1823_v33  ;;  %603 = vmatpush.msrb.mxu1 %v1825_v28  ;;  %v303_v5 = vld [vmem:[#allocation2 + $0x7d0] sm:$0xff]  ;;  %v1850_v28 = vld [vmem:[#allocation2 + $0x300] sm:$0xff] }
  0x75   :  { %2449 = vst [vmem:[#allocation32_spill] sm:$0xff] %v1832_v27  ;;  %623 = vmatpush.msrb.mxu2 %v1829_v14  ;;  %643 = vmatpush.msrb.mxu3 %v321_v19  ;;  %v1852_v33 = vld [vmem:[#allocation2 + $0x780] sm:$0xff]  ;;  %v1856_v19 = vld [vmem:[#allocation2 + $0x308] sm:$0xff] }
  0x76   :  { %2450 = vst [vmem:[#allocation33_spill] sm:$0xff] %v1834_v23  ;;  %584 = vmatpush.msrb.mxu0 %v1832_v27  ;;  %604 = vmatpush.msrb.mxu1 %v1834_v23  ;;  %v294_v14 = vld [vmem:[#allocation2 + $0x788] sm:$0xff]  ;;  %v1859_v23 = vld [vmem:[#allocation2 + $0x2b8] sm:$0xff] }
  0x77   :  { %2451 = vst [vmem:[#allocation34_spill] sm:$0xff] %v1838_v39  ;;  %624 = vmatpush.msrb.mxu2 %v1838_v39  ;;  %644 = vmatpush.msrb.mxu3 %v312_v32  ;;  %v1861_v27 = vld [vmem:[#allocation2 + $0x738] sm:$0xff]  ;;  %v1865_v32 = vld [vmem:[#allocation2 + $0x2c0] sm:$0xff] }
  0x78   :  { %2452 = vst [vmem:[#allocation35_spill] sm:$0xff] %v1841_v9  ;;  %585 = vmatpush.msrb.mxu0 %v1841_v9  ;;  %605 = vmatpush.msrb.mxu1 %v1843_v53  ;;  %v285_v39 = vld [vmem:[#allocation2 + $0x740] sm:$0xff]  ;;  %v1870_v9 = vld [vmem:[#allocation2 + $0x6f0] sm:$0xff] }
  0x79   :  { %2453 = vst [vmem:[#allocation36_spill] sm:$0xff] %v1843_v53  ;;  %625 = vmatpush.msrb.mxu2 %v1847_v15  ;;  %645 = vmatpush.msrb.mxu3 %v303_v5  ;;  %v1868_v53 = vld [vmem:[#allocation2 + $0x270] sm:$0xff]  ;;  %v1874_v5 = vld [vmem:[#allocation2 + $0x278] sm:$0xff] }
  0x7a   :  { %2454 = vst [vmem:[#allocation37_spill] sm:$0xff] %v1847_v15  ;;  %586 = vmatpush.msrb.mxu0 %v1850_v28  ;;  %606 = vmatpush.msrb.mxu1 %v1852_v33  ;;  %v276_v15 = vld [vmem:[#allocation2 + $0x6f8] sm:$0xff] }
  0x7b   :  { %2455 = vst [vmem:[#allocation38_spill] sm:$0xff] %v1850_v28  ;;  %626 = vmatpush.msrb.mxu2 %v1856_v19  ;;  %646 = vmatpush.msrb.mxu3 %v294_v14  ;;  %v1879_v28 = vld [vmem:[#allocation2 + $0x6a8] sm:$0xff]  ;;  %v1883_v14 = vld [vmem:[#allocation2 + $0x230] sm:$0xff] }
  0x7c   :  { %2456 = vst [vmem:[#allocation39_spill] sm:$0xff] %v1852_v33  ;;  %587 = vmatpush.msrb.mxu0 %v1859_v23  ;;  %607 = vmatpush.msrb.mxu1 %v1861_v27  ;;  %v1877_v33 = vld [vmem:[#allocation2 + $0x228] sm:$0xff] }
  0x7d   :  { %2457 = vst [vmem:[#allocation40_spill] sm:$0xff] %v1856_v19  ;;  %627 = vmatpush.msrb.mxu2 %v1865_v32  ;;  %647 = vmatpush.msrb.mxu3 %v285_v39  ;;  %v267_v19 = vld [vmem:[#allocation2 + $0x6b0] sm:$0xff]  ;;  %v1892_v39 = vld [vmem:[#allocation2 + $0x1e8] sm:$0xff] }
  0x7e   :  { %2458 = vst [vmem:[#allocation41_spill] sm:$0xff] %v1859_v23  ;;  %588 = vmatpush.msrb.mxu0 %v1868_v53  ;;  %608 = vmatpush.msrb.mxu1 %v1870_v9  ;;  %v1888_v23 = vld [vmem:[#allocation2 + $0x660] sm:$0xff] }
  0x7f   :  { %2459 = vst [vmem:[#allocation42_spill] sm:$0xff] %v1861_v27  ;;  %628 = vmatpush.msrb.mxu2 %v1874_v5  ;;  %648 = vmatpush.msrb.mxu3 %v276_v15  ;;  %v1886_v27 = vld [vmem:[#allocation2 + $0x1e0] sm:$0xff] }
  0x80   :  { %2460 = vst [vmem:[#allocation43_spill] sm:$0xff] %v1865_v32  ;;  %589 = vmatpush.msrb.mxu0 %v1877_v33  ;;  %609 = vmatpush.msrb.mxu1 %v1879_v28  ;;  %v258_v32 = vld [vmem:[#allocation2 + $0x668] sm:$0xff]  ;;  %v1901_v15 = vld [vmem:[#allocation2 + $0x1a0] sm:$0xff] }
  0x81   :  { %2461 = vst [vmem:[#allocation44_spill] sm:$0xff] %v1868_v53  ;;  %629 = vmatpush.msrb.mxu2 %v1883_v14  ;;  %649 = vmatpush.msrb.mxu3 %v267_v19  ;;  %v1897_v53 = vld [vmem:[#allocation2 + $0x618] sm:$0xff] }
  0x82   :  { %2462 = vst [vmem:[#allocation45_spill] sm:$0xff] %v1870_v9  ;;  %v1895_v9 = vld [vmem:[#allocation2 + $0x198] sm:$0xff]  ;;  %590 = vmatpush.msrb.mxu0 %v1886_v27  ;;  %610 = vmatpush.msrb.mxu1 %v1888_v23 }
  0x83   :  { %2463 = vst [vmem:[#allocation46_spill] sm:$0xff] %v1874_v5  ;;  %v249_v5 = vld [vmem:[#allocation2 + $0x620] sm:$0xff]  ;;  %630 = vmatpush.msrb.mxu2 %v1892_v39  ;;  %650 = vmatpush.msrb.mxu3 %v258_v32  ;;  %v1910_v19 = vld [vmem:[#allocation2 + $0x158] sm:$0xff]  ;;  %v1919_v32 = vld [vmem:[#allocation2 + $0x110] sm:$0xff] }
  0x84   :  { %2464 = vst [vmem:[#allocation47_spill] sm:$0xff] %v1877_v33  ;;  %v1906_v33 = vld [vmem:[#allocation2 + $0x5d0] sm:$0xff]  ;;  %591 = vmatpush.msrb.mxu0 %v1895_v9  ;;  %611 = vmatpush.msrb.mxu1 %v1897_v53 }
  0x85   :  { %2465 = vst [vmem:[#allocation48_spill] sm:$0xff] %v1879_v28  ;;  %v1904_v28 = vld [vmem:[#allocation2 + $0x150] sm:$0xff]  ;;  %631 = vmatpush.msrb.mxu2 %v1901_v15  ;;  %651 = vmatpush.msrb.mxu3 %v249_v5  ;;  %v1928_v5 = vld [vmem:[#allocation2 + $0xc8] sm:$0xff] }
  0x86   :  { %2466 = vst [vmem:[#allocation49_spill] sm:$0xff] %v1883_v14  ;;  %v240_v14 = vld [vmem:[#allocation2 + $0x5d8] sm:$0xff]  ;;  %592 = vmatpush.msrb.mxu0 %v1904_v28  ;;  %612 = vmatpush.msrb.mxu1 %v1906_v33 }
  0x87   :  { %2467 = vst [vmem:[#allocation50_spill] sm:$0xff] %v1886_v27  ;;  %v1915_v27 = vld [vmem:[#allocation2 + $0x588] sm:$0xff]  ;;  %632 = vmatpush.msrb.mxu2 %v1910_v19  ;;  %652 = vmatpush.msrb.mxu3 %v240_v14  ;;  %v1939_v14 = vld [vmem:[#allocation2 + $0x80] sm:$0xff] }
  0x88   :  { %2468 = vst [vmem:[#allocation51_spill] sm:$0xff] %v1888_v23  ;;  %v1913_v23 = vld [vmem:[#allocation2 + $0x108] sm:$0xff]  ;;  %613 = vmatpush.msrb.mxu1 %v1915_v27 }
  0x89   :  { %2469 = vst [vmem:[#allocation52_spill] sm:$0xff] %v1892_v39  ;;  %v231_v39 = vld [vmem:[#allocation2 + $0x590] sm:$0xff]  ;;  %593 = vmatpush.msrb.mxu0 %v1913_v23  ;;  %633 = vmatpush.msrb.mxu2 %v1919_v32 }
  0x8a   :  { %2470 = vst [vmem:[#allocation53_spill] sm:$0xff] %v1895_v9  ;;  %v1924_v9 = vld [vmem:[#allocation2 + $0x540] sm:$0xff]  ;;  %653 = vmatpush.msrb.mxu3 %v231_v39  ;;  %v1951_v39 = vld [vmem:[#allocation2 + $0x38] sm:$0xff] }
  0x8b   :  { %2471 = vst [vmem:[#allocation54_spill] sm:$0xff] %v1897_v53  ;;  %v1922_v53 = vld [vmem:[#allocation2 + $0xc0] sm:$0xff]  ;;  %614 = vmatpush.msrb.mxu1 %v1924_v9  ;;  %634 = vmatpush.msrb.mxu2 %v1928_v5 }
  0x8c   :  { %2472 = vst [vmem:[#allocation55_spill] sm:$0xff] %v1901_v15  ;;  %v1930_v15 = vld [vmem:[#allocation2 + $0x548] sm:$0xff]  ;;  %594 = vmatpush.msrb.mxu0 %v1922_v53 }
  0x8d   :  { %2473 = vst [vmem:[#allocation56_spill] sm:$0xff] %v1904_v28  ;;  %v1935_v28 = vld [vmem:[#allocation2 + $0x4f8] sm:$0xff]  ;;  %654 = vmatpush.msrb.mxu3 %v1930_v15  ;;  %635 = vmatpush.msrb.mxu2 %v1939_v14 }
  0x8e   :  { %2474 = vst [vmem:[#allocation57_spill] sm:$0xff] %v1906_v33  ;;  %v1933_v33 = vld [vmem:[#allocation2 + $0x78] sm:$0xff]  ;;  %615 = vmatpush.msrb.mxu1 %v1935_v28 }
  0x8f   :  { %2475 = vst [vmem:[#allocation58_spill] sm:$0xff] %v1913_v23  ;;  %v1941_v23 = vld [vmem:[#allocation2 + $0x500] sm:$0xff]  ;;  %595 = vmatpush.msrb.mxu0 %v1933_v33  ;;  %636 = vmatpush.msrb.mxu2 %v1951_v39 }
  0x90   :  { %2476 = vst [vmem:[#allocation59_spill] sm:$0xff] %v1915_v27  ;;  %v1945_v27 = vld [vmem:[#allocation2 + $0x30] sm:$0xff]  ;;  %655 = vmatpush.msrb.mxu3 %v1941_v23  ;;  %637 = vmatmul.f32.vlgmr.msrb.gmra.mxu2 %v1593_v48 }
  0x91   :  { %2477 = vst [vmem:[#allocation60_spill] sm:$0xff] %v1919_v32  ;;  %v1947_v32 = vld [vmem:[#allocation2 + $0x4b0] sm:$0xff]  ;;  %596 = vmatpush.msrb.mxu0 %v1945_v27  ;;  %833 = vmatpush.msra.mxu2 %v1598_v49 }
  0x92   :  { %2478 = vst [vmem:[#allocation61_spill] sm:$0xff] %v1922_v53  ;;  %v1953_v53 = vld [vmem:[#allocation2 + $0x4b8] sm:$0xff]  ;;  %616 = vmatpush.msrb.mxu1 %v1947_v32  ;;  %597 = vmatmul.f32.vlgmr.msrb.gmra.mxu0 %v1593_v48 }
  0x93   :  { %2479 = vst [vmem:[#allocation62_spill] sm:$0xff] %v1924_v9  ;;  %656 = vmatpush.msrb.mxu3 %v1953_v53  ;;  %617 = vmatmul.f32.vlgmr.msrb.gmra.mxu1 %v1598_v49  ;;  %v1337_v9 = vld [vmem:[#allocation2 + $0x438] sm:$0xff] }
  0x94   :  { %2480 = vst [vmem:[#allocation63_spill] sm:$0xff] %v1928_v5  ;;  %657 = vmatmul.f32.vlgmr.msrb.gmra.mxu3 %v1598_v49  ;;  %v2009_v5 = vld [vmem:[#allocation2 + $0x790] sm:$0xff] }
  0x95   :  { %2481 = vst [vmem:[#allocation64_spill] sm:$0xff] %v1930_v15  ;;  %v1961_v15 = vld [vmem:[#allocation2 + $0x478] sm:$0xff]  ;;  %813 = vmatpush.msra.mxu3 %v1593_v48 }
  0x96   :  { %2482 = vst [vmem:[#allocation65_spill] sm:$0xff] %v1933_v33  ;;  %v1963_v33 = vld [vmem:[#allocation2 + $0x8f8] sm:$0xff]  ;;  %661 = vmatpush.msra.mxu0 %v1961_v15 }
  0x97   :  { %2483 = vst [vmem:[#allocation66_spill] sm:$0xff] %v1935_v28  ;;  %681 = vmatpush.msra.mxu1 %v1963_v33  ;;  %v2500_v28 = vmov 0   ;;  %840 = vmatpush.msrb.mxu3 %v1337_v9  ;;  %v2034_v9 = vld [vmem:[#allocation2 + $0x1f0] sm:$0xff] }
  0x98   :  { %2484 = vst [vmem:[#allocation67_spill] sm:$0xff] %v1939_v14  ;;  %v1984_v14 = vld [vmem:[#allocation2 + $0x3a0] sm:$0xff]  ;;  %1323 = vset.pattern.permute.xlu0 %v2500_v28 }
  0x99   :  { %2485 = vst [vmem:[#allocation68_spill] sm:$0xff] %v1941_v23  ;;  %v1969_v23 = vld [vmem:[#allocation2 + $0x430] sm:$0xff] }
  0x9a   :  { %2486 = vst [vmem:[#allocation69_spill] sm:$0xff] %v1945_v27  ;;  %v1971_v27 = vld [vmem:[#allocation2 + $0x8b0] sm:$0xff]  ;;  %662 = vmatpush.msra.mxu0 %v1969_v23 }
  0x9b   :  { %2487 = vst [vmem:[#allocation70_spill] sm:$0xff] %v1947_v32  ;;  %v1978_v32 = vld [vmem:[#allocation2 + $0x868] sm:$0xff]  ;;  %682 = vmatpush.msra.mxu1 %v1971_v27 }
  0x9c   :  { %2488 = vst [vmem:[#allocation71_spill] sm:$0xff] %v1951_v39  ;;  %v1976_v39 = vld [vmem:[#allocation2 + $0x3e8] sm:$0xff] }
  0x9d   :  { %2489 = vst [vmem:[#allocation72_spill] sm:$0xff] %v1953_v53  ;;  %v2384_v53 = vmov 4   ;;  %663 = vmatpush.msra.mxu0 %v1976_v39  ;;  %683 = vmatpush.msra.mxu1 %v1978_v32 }
  0x9e   :  { %2490 = vst [vmem:[#allocation73_spill] sm:$0xff] %v1961_v15  ;;  %1319 = vset.pattern.permute.xlu2 %v2384_v53  ;;  %v1986_v15 = vld [vmem:[#allocation2 + $0x820] sm:$0xff] }
  0x9f   :  { %2491 = vst [vmem:[#allocation74_spill] sm:$0xff] %v1963_v33  ;;  %727 = vperm.xlu2 %1319, %v1669_v11   ;;  %v788_v53 = vld [vmem:[%s2306_s4] sm:$0xff]  ;;  %v2392_v33 = vmov 6   ;;  %664 = vmatpush.msra.mxu0 %v1984_v14 }
  0xa0   :  { %2492 = vst [vmem:[#allocation75_spill] sm:$0xff] %v1969_v23  ;;  %v1994_v23 = vld [vmem:[#allocation2 + $0x358] sm:$0xff]  ;;  %1321 = vset.pattern.permute.xlu1 %v2392_v33  ;;  %684 = vmatpush.msra.mxu1 %v1986_v15  ;;  %v2013_v33 = vld [vmem:[#allocation2 + $0x2c8] sm:$0xff] }
  0xa1   :  { %2493 = vst [vmem:[#allocation76_spill] sm:$0xff] %v1971_v27  ;;  %v1996_v27 = vld [vmem:[#allocation2 + $0x7d8] sm:$0xff]  ;;  %1299 = vmatmul.msk.f32.vlgmr.msra.gmra.mxu3 %vm763_vm0, %v788_v53  ;;  %1300 = vmatmul.msk.f32.vlgmr.msra.gmra.mxu2 %vm763_vm0, %v788_v53  ;;  %v2399_v53 = vmov 5  }
  0xa2   :  { %2494 = vst [vmem:[#allocation77_spill] sm:$0xff] %v1976_v39  ;;  %v2007_v39 = vld [vmem:[#allocation2 + $0x310] sm:$0xff]  ;;  %665 = vmatpush.msra.mxu0 %v1994_v23  ;;  %685 = vmatpush.msra.mxu1 %v1996_v27 }
  0xa3   :  { %2495 = vst [vmem:[#allocation78_spill] sm:$0xff] %v1978_v32  ;;  %v789_v32 = vld [vmem:[%s2307_s5] sm:$0xff]  ;;  %739 = vperm.xlu1 %1321, %v1669_v11  }
  0xa4   :  { %2496 = vst [vmem:[#allocation79_spill] sm:$0xff] %v1984_v14  ;;  %792 = vperm.xlu0 %1323, %v789_v32   ;;  %666 = vmatpush.msra.mxu0 %v2007_v39  ;;  %v2021_v14 = vld [vmem:[#allocation2 + $0x280] sm:$0xff]  ;;  %v2028_v32 = vld [vmem:[#allocation2 + $0x238] sm:$0xff] }
  0xa5   :  { %2497 = vst [vmem:[#allocation80_spill] sm:$0xff] %v1986_v15  ;;  %686 = vmatpush.msra.mxu1 %v2009_v5  ;;  %v2018_v15 = vld [vmem:[#allocation2 + $0x748] sm:$0xff] }
  0xa6   :  { %2498 = vst [vmem:[#allocation81_spill] sm:$0xff] %v1994_v23  ;;  %667 = vmatpush.msra.mxu0 %v2013_v33  ;;  %v1340_v23 = vld [vmem:[#allocation2 + $0x870] sm:$0xff] }
  0xa7   :  { %2499 = vst [vmem:[#allocation82_spill] sm:$0xff] %v1996_v27  ;;  %1320 = vset.pattern.permute.xlu2 %v2399_v53  ;;  %v2025_v27 = vld [vmem:[#allocation2 + $0x700] sm:$0xff]  ;;  %687 = vmatpush.msra.mxu1 %v2018_v15  ;;  %v1339_v53 = vld [vmem:[#allocation2 + $0x3f0] sm:$0xff] }
  0xa8   :  { %2501 = vst [vmem:[#allocation83_spill] sm:$0xff] %v2007_v39  ;;  %733 = vperm.xlu2 %1320, %v1669_v11   ;;  %668 = vmatpush.msra.mxu0 %v2021_v14  ;;  %v2031_v39 = vld [vmem:[#allocation2 + $0x6b8] sm:$0xff] }
  0xa9   :  { %2502 = vst [vmem:[#allocation84_spill] sm:$0xff] %v2009_v5  ;;  %v1338_v5 = vld [vmem:[#allocation2 + $0x8b8] sm:$0xff]  ;;  %841 = vmatpush.msrb.mxu3 %v1339_v53  ;;  %688 = vmatpush.msra.mxu1 %v2025_v27  ;;  %v2044_v53 = vld [vmem:[#allocation2 + $0x628] sm:$0xff] }
  0xaa   :  { %2503 = vst [vmem:[#allocation85_spill] sm:$0xff] %v2013_v33  ;;  %860 = vmatpush.msrb.mxu2 %v1338_v5  ;;  %669 = vmatpush.msra.mxu0 %v2028_v32  ;;  %v2037_v33 = vld [vmem:[#allocation2 + $0x670] sm:$0xff]  ;;  %v2040_v5 = vld [vmem:[#allocation2 + $0x1a8] sm:$0xff] }
  0xab   :  { %2504 = vst [vmem:[#allocation86_spill] sm:$0xff] %v2018_v15  ;;  %v1341_v15 = vld [vmem:[#allocation2 + $0x3a8] sm:$0xff]  ;;  %689 = vmatpush.msra.mxu1 %v2031_v39 }
  0xac   :  { %2505 = vst [vmem:[#allocation87_spill] sm:$0xff] %v2021_v14  ;;  %861 = vmatpush.msrb.mxu2 %v1340_v23  ;;  %842 = vmatpush.msrb.mxu3 %v1341_v15  ;;  %v2406_v14 = vmov 8   ;;  %v2048_v23 = vld [vmem:[#allocation2 + $0x160] sm:$0xff] }
  0xad   :  { %2506 = vst [vmem:[#allocation88_spill] sm:$0xff] %v2028_v32  ;;  %1324 = vset.pattern.permute.xlu1 %v2406_v14  ;;  %670 = vmatpush.msra.mxu0 %v2034_v9  ;;  %v1342_v32 = vld [vmem:[#allocation2 + $0x828] sm:$0xff]  ;;  %v2051_v15 = vld [vmem:[#allocation2 + $0x5e0] sm:$0xff]  ;;  %v2055_v14 = vld [vmem:[#allocation2 + $0x118] sm:$0xff] }
  0xae   :  { %2507 = vst [vmem:[#allocation89_spill] sm:$0xff] %v2031_v39  ;;  %751 = vperm.xlu1 %1324, %v1669_v11   ;;  %690 = vmatpush.msra.mxu1 %v2037_v33  ;;  %v2410_v39 = vmov 7  }
  0xaf   :  { %2508 = vst [vmem:[#allocation90_spill] sm:$0xff] %v2034_v9  ;;  %862 = vmatpush.msrb.mxu2 %v1342_v32  ;;  %671 = vmatpush.msra.mxu0 %v2040_v5  ;;  %v1343_v9 = vld [vmem:[#allocation2 + $0x360] sm:$0xff]  ;;  %v2062_v32 = vld [vmem:[#allocation2 + $0xd0] sm:$0xff] }
  0xb0   :  { %2509 = vst [vmem:[#allocation91_spill] sm:$0xff] %v2037_v33  ;;  %1322 = vset.pattern.permute.xlu2 %v2410_v39  ;;  %691 = vmatpush.msra.mxu1 %v2044_v53  ;;  %v2059_v33 = vld [vmem:[#allocation2 + $0x598] sm:$0xff]  ;;  %v2065_v39 = vld [vmem:[#allocation2 + $0x550] sm:$0xff] }
  0xb1   :  { %2510 = vst [vmem:[#allocation92_spill] sm:$0xff] %v2040_v5  ;;  %745 = vperm.xlu2 %1322, %v1669_v11   ;;  %672 = vmatpush.msra.mxu0 %v2048_v23  ;;  %v1344_v5 = vld [vmem:[#allocation2 + $0x7e0] sm:$0xff]  ;;  %v2068_v11 = vld [vmem:[#allocation2 + $0x88] sm:$0xff] }
  0xb2   :  { %2511 = vst [vmem:[#allocation93_spill] sm:$0xff] %v2044_v53  ;;  %843 = vmatpush.msrb.mxu3 %v1343_v9  ;;  %692 = vmatpush.msra.mxu1 %v2051_v15  ;;  %v1345_v53 = vld [vmem:[#allocation2 + $0x318] sm:$0xff]  ;;  %v2071_v9 = vld [vmem:[#allocation2 + $0x508] sm:$0xff] }
  0xb3   :  { %2512 = vst [vmem:[#allocation94_spill] sm:$0xff] %v2048_v23  ;;  %863 = vmatpush.msrb.mxu2 %v1344_v5  ;;  %673 = vmatpush.msra.mxu0 %v2055_v14  ;;  %v1346_v23 = vld [vmem:[#allocation2 + $0x798] sm:$0xff]  ;;  %v2074_v5 = vld [vmem:[#allocation2 + $0x40] sm:$0xff] }
  0xb4   :  { %2513 = vst [vmem:[#allocation95_spill] sm:$0xff] %v2051_v15  ;;  %844 = vmatpush.msrb.mxu3 %v1345_v53  ;;  %693 = vmatpush.msra.mxu1 %v2059_v33  ;;  %v1347_v15 = vld [vmem:[#allocation2 + $0x2d0] sm:$0xff]  ;;  %v2077_v53 = vld [vmem:[#allocation2 + $0x4c0] sm:$0xff] }
  0xb5   :  { %2514 = vst [vmem:[#allocation96_spill] sm:$0xff] %v2055_v14  ;;  %864 = vmatpush.msrb.mxu2 %v1346_v23  ;;  %674 = vmatpush.msra.mxu0 %v2062_v32  ;;  %v1348_v14 = vld [vmem:[#allocation2 + $0x750] sm:$0xff]  ;;  %v1350_v23 = vld [vmem:[#allocation2 + $0x708] sm:$0xff] }
  0xb6   :  { %2515 = vst [vmem:[#allocation97_spill] sm:$0xff] %v2059_v33  ;;  %845 = vmatpush.msrb.mxu3 %v1347_v15  ;;  %694 = vmatpush.msra.mxu1 %v2065_v39  ;;  %v1349_v33 = vld [vmem:[#allocation2 + $0x288] sm:$0xff]  ;;  %v1353_v15 = vld [vmem:[#allocation2 + $0x6c0] sm:$0xff] }
  0xb7   :  { %2516 = vst [vmem:[#allocation98_spill] sm:$0xff] %v2062_v32  ;;  %865 = vmatpush.msrb.mxu2 %v1348_v14  ;;  %675 = vmatpush.msra.mxu0 %v2068_v11  ;;  %v1351_v32 = vld [vmem:[#allocation2 + $0x240] sm:$0xff] }
  0xb8   :  { %2517 = vst [vmem:[#allocation99_spill] sm:$0xff] %v2065_v39  ;;  %846 = vmatpush.msrb.mxu3 %v1349_v33  ;;  %695 = vmatpush.msra.mxu1 %v2071_v9  ;;  %v1352_v14 = vld [vmem:[#allocation2 + $0x440] sm:$0xff]  ;;  %v1355_v33 = vld [vmem:[#allocation2 + $0x3f8] sm:$0xff] }
  0xb9   :  { %2518 = vst [vmem:[#allocation100_spill] sm:$0xff] %v2068_v11  ;;  %866 = vmatpush.msrb.mxu2 %v1350_v23  ;;  %676 = vmatpush.msra.mxu0 %v2074_v5  ;;  %v1354_v11 = vld [vmem:[#allocation2 + $0x1f8] sm:$0xff] }
  0xba   :  { %2519 = vst [vmem:[#allocation101_spill] sm:$0xff] %v2071_v9  ;;  %847 = vmatpush.msrb.mxu3 %v1351_v32  ;;  %696 = vmatpush.msra.mxu1 %v2077_v53  ;;  %v1356_v23 = vld [vmem:[#allocation2 + $0x678] sm:$0xff]  ;;  %v1358_v32 = vld [vmem:[#allocation2 + $0x3b0] sm:$0xff]  ;;  %v1364_v9 = vld [vmem:[#allocation2 + $0x320] sm:$0xff] }
  0xbb   :  { %2520 = vst [vmem:[#allocation102_spill] sm:$0xff] %v2074_v5  ;;  %677 = vmatmul.f32.vlgmr.msra.gmra.mxu0 %v1593_v48  ;;  %697 = vmatmul.f32.vlgmr.msra.gmra.mxu1 %v1598_v49  ;;  %v1357_v5 = vld [vmem:[#allocation2 + $0x1b0] sm:$0xff]  ;;  %v1360_v49 = vld [vmem:[#allocation2 + $0x168] sm:$0xff] }
  0xbc   :  { %2521 = vst [vmem:[#allocation103_spill] sm:$0xff] %v2077_v53  ;;  %880 = vmatpush.msrb.mxu0 %v1352_v14  ;;  %867 = vmatpush.msrb.mxu2 %v1353_v15  ;;  %v2522_v53 = vmov 1   ;;  %v1359_v48 = vld [vmem:[#allocation2 + $0x630] sm:$0xff]  ;;  %v1361_v14 = vld [vmem:[#allocation2 + $0x368] sm:$0xff]  ;;  %v2523_v15 = vmov 3  }
  0xbd   :  { %848 = vmatpush.msrb.mxu3 %v1354_v11  ;;  %1325 = vset.pattern.permute.xlu2 %v2500_v28  ;;  %v1362_v11 = vld [vmem:[#allocation2 + $0x5e8] sm:$0xff] }
  0xbe   :  { %881 = vmatpush.msrb.mxu0 %v1355_v33  ;;  %868 = vmatpush.msrb.mxu2 %v1356_v23  ;;  %v1363_v33 = vld [vmem:[#allocation2 + $0x120] sm:$0xff] }
  0xbf   :  { %849 = vmatpush.msrb.mxu3 %v1357_v5  ;;  %1326 = vset.pattern.permute.xlu1 %v2522_v53  ;;  %v1365_v23 = vld [vmem:[#allocation2 + $0x5a0] sm:$0xff]  ;;  %v1366_v5 = vld [vmem:[#allocation2 + $0xd8] sm:$0xff] }
  0xc0   :  { %882 = vmatpush.msrb.mxu0 %v1358_v32  ;;  %869 = vmatpush.msrb.mxu2 %v1359_v48  ;;  %v1367_v32 = vld [vmem:[#allocation2 + $0x2d8] sm:$0xff]  ;;  %v1369_v48 = vld [vmem:[#allocation2 + $0x90] sm:$0xff] }
  0xc1   :  { %850 = vmatpush.msrb.mxu3 %v1360_v49  ;;  %1328 = vset.pattern.permute.xlu0 %v2523_v15  ;;  %v1368_v53 = vld [vmem:[#allocation2 + $0x558] sm:$0xff]  ;;  %v1370_v49 = vld [vmem:[#allocation2 + $0x290] sm:$0xff]  ;;  %v1372_v15 = vld [vmem:[#allocation2 + $0x48] sm:$0xff] }
  0xc2   :  { %883 = vmatpush.msrb.mxu0 %v1361_v14  ;;  %870 = vmatpush.msrb.mxu2 %v1362_v11  ;;  %v1371_v14 = vld [vmem:[#allocation2 + $0x510] sm:$0xff]  ;;  %v1373_v11 = vld [vmem:[#allocation2 + $0x248] sm:$0xff] }
  0xc3   :  { %851 = vmatpush.msrb.mxu3 %v1363_v33  ;;  %v1374_v33 = vld [vmem:[#allocation2 + $0x4c8] sm:$0xff] }
  0xc4   :  { %884 = vmatpush.msrb.mxu0 %v1364_v9  ;;  %871 = vmatpush.msrb.mxu2 %v1365_v23  ;;  %v1375_v9 = vld [vmem:[#allocation2] sm:$0xff] }
  0xc5   :  { %852 = vmatpush.msrb.mxu3 %v1366_v5  ;;  %v1376_v23 = vld [vmem:[#allocation2 + $0x200] sm:$0xff]  ;;  %v1377_v5 = vld [vmem:[#allocation2 + $0x448] sm:$0xff] }
  0xc6   :  { %885 = vmatpush.msrb.mxu0 %v1367_v32  ;;  %872 = vmatpush.msrb.mxu2 %v1368_v53  ;;  %v1378_v32 = vld [vmem:[#allocation2 + $0x480] sm:$0xff]  ;;  %v1379_v53 = vld [vmem:[#allocation2 + $0x1b8] sm:$0xff] }
  0xc7   :  { %853 = vmatpush.msrb.mxu3 %v1369_v48  ;;  %v1380_v48 = vld [vmem:[#allocation2 + $0x8c8] sm:$0xff] }
  0xc8   :  { %886 = vmatpush.msrb.mxu0 %v1370_v49  ;;  %873 = vmatpush.msrb.mxu2 %v1371_v14  ;;  %v1381_v49 = vld [vmem:[#allocation2 + $0x400] sm:$0xff]  ;;  %v1382_v14 = vld [vmem:[#allocation2 + $0x170] sm:$0xff] }
  0xc9   :  { %854 = vmatpush.msrb.mxu3 %v1372_v15  ;;  %v1383_v15 = vld [vmem:[#allocation2 + $0x880] sm:$0xff] }
  0xca   :  { %887 = vmatpush.msrb.mxu0 %v1373_v11  ;;  %874 = vmatpush.msrb.mxu2 %v1374_v33  ;;  %v1384_v11 = vld [vmem:[#allocation2 + $0x3b8] sm:$0xff]  ;;  %v1385_v33 = vld [vmem:[#allocation2 + $0x128] sm:$0xff] }
  0xcb   :  { %855 = vmatpush.msrb.mxu3 %v1375_v9  ;;  %v1386_v9 = vld [vmem:[#allocation2 + $0x838] sm:$0xff] }
  0xcc   :  { %888 = vmatpush.msrb.mxu0 %v1376_v23  ;;  %875 = vmatpush.msrb.mxu2 %v1378_v32  ;;  %v1387_v23 = vld [vmem:[#allocation2 + $0x370] sm:$0xff] }
  0xcd   :  { %920 = vmatpush.msra.mxu3 %v1377_v5  ;;  %v1388_v5 = vld [vmem:[#allocation2 + $0xe0] sm:$0xff]  ;;  %v1389_v32 = vld [vmem:[#allocation2 + $0x7f0] sm:$0xff] }
  0xce   :  { %889 = vmatpush.msrb.mxu0 %v1379_v53  ;;  %940 = vmatpush.msra.mxu2 %v1380_v48  ;;  %v1390_v53 = vld [vmem:[#allocation2 + $0x328] sm:$0xff]  ;;  %v1391_v48 = vld [vmem:[#allocation2 + $0x98] sm:$0xff] }
  0xcf   :  { %921 = vmatpush.msra.mxu3 %v1381_v49  ;;  %v1392_v49 = vld [vmem:[#allocation2 + $0x7a8] sm:$0xff] }
  0xd0   :  { %890 = vmatpush.msrb.mxu0 %v1382_v14  ;;  %941 = vmatpush.msra.mxu2 %v1383_v15  ;;  %v1393_v14 = vld [vmem:[#allocation2 + $0x2e0] sm:$0xff]  ;;  %v1394_v15 = vld [vmem:[#allocation2 + $0x50] sm:$0xff] }
  0xd1   :  { %922 = vmatpush.msra.mxu3 %v1384_v11  ;;  %v1395_v11 = vld [vmem:[#allocation2 + $0x760] sm:$0xff] }
  0xd2   :  { %891 = vmatpush.msrb.mxu0 %v1385_v33  ;;  %942 = vmatpush.msra.mxu2 %v1386_v9  ;;  %v1396_v33 = vld [vmem:[#allocation2 + $0x298] sm:$0xff]  ;;  %v1397_v9 = vld [vmem:[#allocation2 + $0x8] sm:$0xff] }
  0xd3   :  { %923 = vmatpush.msra.mxu3 %v1387_v23  ;;  %v1398_v23 = vld [vmem:[#allocation2 + $0x718] sm:$0xff] }
  0xd4   :  { %892 = vmatpush.msrb.mxu0 %v1388_v5  ;;  %943 = vmatpush.msra.mxu2 %v1389_v32  ;;  %v1399_v5 = vld [vmem:[#allocation2 + $0x450] sm:$0xff] }
  0xd5   :  { %924 = vmatpush.msra.mxu3 %v1390_v53  ;;  %v1400_v32 = vld [vmem:[#allocation2 + $0x250] sm:$0xff] }
  0xd6   :  { %893 = vmatpush.msrb.mxu0 %v1391_v48  ;;  %944 = vmatpush.msra.mxu2 %v1392_v49  ;;  %v1401_v53 = vld [vmem:[#allocation2 + $0x6d0] sm:$0xff]  ;;  %v1402_v48 = vld [vmem:[#allocation2 + $0x408] sm:$0xff] }
  0xd7   :  { %925 = vmatpush.msra.mxu3 %v1393_v14  ;;  %v1403_v49 = vld [vmem:[#allocation2 + $0x208] sm:$0xff] }
  0xd8   :  { %894 = vmatpush.msrb.mxu0 %v1394_v15  ;;  %945 = vmatpush.msra.mxu2 %v1395_v11  ;;  %v1404_v14 = vld [vmem:[#allocation2 + $0x688] sm:$0xff]  ;;  %v1405_v15 = vld [vmem:[#allocation2 + $0x3c0] sm:$0xff]  ;;  %v1406_v11 = vld [vmem:[#allocation2 + $0x378] sm:$0xff] }
  0xd9   :  { %926 = vmatpush.msra.mxu3 %v1396_v33  ;;  %v1407_v33 = vld [vmem:[#allocation2 + $0x330] sm:$0xff] }
  0xda   :  { %895 = vmatpush.msrb.mxu0 %v1397_v9  ;;  %946 = vmatpush.msra.mxu2 %v1398_v23  ;;  %v1408_v9 = vld [vmem:[#allocation2 + $0x2e8] sm:$0xff] }
  0xdb   :  { %927 = vmatpush.msra.mxu3 %v1400_v32 }
  0xdc   :  { %960 = vmatpush.msra.mxu0 %v1399_v5  ;;  %947 = vmatpush.msra.mxu2 %v1401_v53  ;;  %v716_v5 = vpop.permute.xlu1 %715 }
  0xdd   :  { %928 = vmatpush.msra.mxu3 %v1403_v49 }
  0xde   :  { %961 = vmatpush.msra.mxu0 %v1402_v48  ;;  %948 = vmatpush.msra.mxu2 %v1404_v14 }
  0xdf   :  { %929 = vmatpush.msra.mxu3 %v1572_v36  ;;  %v1409_v36 = vld [vmem:[#allocation2 + $0x2a0] sm:$0xff] }
  0xe0   :  { %962 = vmatpush.msra.mxu0 %v1405_v15  ;;  %949 = vmatpush.msra.mxu2 %v1574_v37  ;;  %v1410_v37 = vld [vmem:[#allocation2 + $0x258] sm:$0xff] }
  0xe1   :  { %930 = vmatpush.msra.mxu3 %v1576_v40  ;;  %v1411_v40 = vld [vmem:[#allocation2 + $0x210] sm:$0xff] }
  0xe2   :  { %963 = vmatpush.msra.mxu0 %v1406_v11  ;;  %950 = vmatpush.msra.mxu2 %v1578_v41  ;;  %v1412_v41 = vld [vmem:[#allocation2 + $0x1c8] sm:$0xff] }
  0xe3   :  { %931 = vmatpush.msra.mxu3 %v1582_v44  ;;  %v1413_v44 = vld [vmem:[#allocation2 + $0x180] sm:$0xff] }
  0xe4   :  { %964 = vmatpush.msra.mxu0 %v1407_v33  ;;  %951 = vmatpush.msra.mxu2 %v1584_v45  ;;  %v398_v45 = vpop.f32.mrf.mxu2 }
  0xe5   :  { %932 = vmatpush.msra.mxu3 %v1602_v50  ;;  %v418_v50 = vpop.f32.mrf.mxu3 }
  0xe6   :  { %965 = vmatpush.msra.mxu0 %v1408_v9  ;;  %952 = vmatpush.msra.mxu2 %v1604_v51  ;;  %v419_v49 = vadd.f32 %v418_v50, %v398_v45 }
  0xe7   :  { %933 = vmatpush.msra.mxu3 %v1613_v54 }
  0xe8   :  { %966 = vmatpush.msra.mxu0 %v1409_v36  ;;  %953 = vmatpush.msra.mxu2 %v1615_v55  ;;  %v705_v55 = vpop.permute.xlu0 %704  ;;  %v722_v36 = vpop.permute.xlu1 %721 }
  0xe9   :  { %934 = vmatpush.msra.mxu3 %v1622_v58  ;;  %v358_v58 = vpop.f32.mrf.mxu0 }
  0xea   :  { %967 = vmatpush.msra.mxu0 %v1410_v37  ;;  %954 = vmatpush.msra.mxu2 %v1624_v59  ;;  %v378_v59 = vpop.f32.mrf.mxu1 }
  0xeb   :  { %935 = vmatpush.msra.mxu3 %v1631_v62 }
  0xec   :  { %968 = vmatpush.msra.mxu0 %v1411_v40  ;;  %955 = vmatpush.msra.mxu2 %v1633_v63  ;;  %v478_v51 = vpop.f32.mrf.mxu2 }
  0xed   :  { %v498_v54 = vpop.f32.mrf.mxu3 }
  0xee   :  { %969 = vmatpush.msra.mxu0 %v1412_v41 }
  0xf0   :  { %970 = vmatpush.msra.mxu0 %v1413_v44  ;;  %v710_v23 = vpop.permute.xlu0 %709 }
  0xf1   :  { %v712_v44 = vmul.f32 %v710_v23, %v419_v49  ;;  %v2539_v49 = vld [vmem:[#allocation20_spill] sm:$0xff] }
  0xf2   :  { %971 = vmatpush.msra.mxu0 %v1588_v46  ;;  %v458_v53 = vpop.f32.mrf.mxu1 }
  0xf4   :  { %972 = vmatpush.msra.mxu0 %v1607_v52  ;;  %v558_v62 = vpop.f32.mrf.mxu2  ;;  %v438_v52 = vpop.f32.mrf.mxu0 }
  0xf5   :  { %v578_v63 = vpop.f32.mrf.mxu3  ;;  %v459_v39 = vadd.f32 %v458_v53, %v438_v52  ;;  %v2536_v52 = vld [vmem:[#allocation17_spill] sm:$0xff] }
  0xf6   :  { %973 = vmatpush.msra.mxu0 %v1618_v56  ;;  %v1418_v53 = vld [vmem:[#allocation2 + $0x7a0] sm:$0xff] }
  0xf8   :  { %974 = vmatpush.msra.mxu0 %v1628_v60  ;;  %v379_v60 = vadd.f32 %v378_v59, %v358_v58  ;;  %v499_v58 = vadd.f32 %v498_v54, %v478_v51  ;;  %v718_v59 = vmul.f32 %v716_v5, %v459_v39  ;;  %v579_v54 = vadd.f32 %v578_v63, %v558_v62  ;;  %v2533_v63 = vld [vmem:[#allocation14_spill] sm:$0xff] }
  0xf9   :  { %v728_v56 = vpop.permute.xlu2 %727  ;;  %v1417_v5 = vld [vmem:[#allocation2 + $0x7e8] sm:$0xff] }
  0xfa   :  { %975 = vmatpush.msra.mxu0 %v1637_v0  ;;  %v538_v11 = vpop.f32.mrf.mxu1  ;;  %v707_v41 = vmul.f32 %v705_v55, %v379_v60  ;;  %v724_v51 = vmul.f32 %v722_v36, %v499_v58  ;;  %v2538_v60 = vld [vmem:[#allocation19_spill] sm:$0xff]  ;;  %v2547_v58 = vld [vmem:[#allocation28_spill] sm:$0xff] }
  0xfb   :  { %v1420_v36 = vld [vmem:[#allocation2 + $0x710] sm:$0xff] }
  0xfc   :  { %v518_v15 = vpop.f32.mrf.mxu0  ;;  %v713_v50 = vadd.f32 %v712_v44, %v707_v41  ;;  %v2545_v41 = vld [vmem:[#allocation26_spill] sm:$0xff]  ;;  %v2546_v44 = vld [vmem:[#allocation27_spill] sm:$0xff] }
 0x102   :  { %v734_v45 = vpop.permute.xlu2 %733 }
 0x10f   :  { %v598_v55 = vpop.f32.mrf.mxu0 }
 0x110   :  { %v618_v23 = vpop.f32.mrf.mxu1 }
 0x111   :  { %v619_v39 = vadd.f32 %v618_v23, %v598_v55  ;;  %v1422_v55 = vld [vmem:[#allocation2 + $0x680] sm:$0xff]  ;;  %v2551_v23 = vld [vmem:[#allocation32_spill] sm:$0xff] }
 0x113   :  { %v638_v46 = vpop.f32.mrf.mxu2 }
 0x116   :  { %v793_v48 = vpop.permute.xlu0 %792 }
 0x117   :  { %v658_v32 = vpop.f32.mrf.mxu3 }
 0x124   :  { %v815_v0 = vpop.f32.mrf.mxu3  ;;  %v835_v14 = vpop.f32.mrf.mxu2 }
 0x125   :  { %v816_v33 = vadd.f32 %v815_v0, %v793_v48  ;;  %v836_v9 = vadd.f32 %v835_v14, %v793_v48  ;;  %v539_v48 = vadd.f32 %v538_v11, %v518_v15  ;;  %v1419_v0 = vld [vmem:[#allocation2 + $0x758] sm:$0xff]  ;;  %v2540_v14 = vld [vmem:[#allocation21_spill] sm:$0xff]  ;;  %v2541_v15 = vld [vmem:[#allocation22_spill] sm:$0xff] }
 0x126   :  { %v2542_v11 = vld [vmem:[#allocation23_spill] sm:$0xff] }
 0x127   :  { %v2106_v37 = vmax.f32 %v816_v33, 0.0  ;;  %v2108_v40 = vmax.f32 %v836_v9, 0.0  ;;  %v2543_v33 = vld [vmem:[#allocation24_spill] sm:$0xff]  ;;  %v2544_v9 = vld [vmem:[#allocation25_spill] sm:$0xff] }
 0x129   :  { %856 = vmatmul.f32.vlgmr.msrb.gmra.mxu3 %v2106_v37  ;;  %876 = vmatmul.f32.vlgmr.msrb.gmra.mxu2 %v2108_v40 }
 0x12a   :  { %896 = vmatmul.f32.vlgmr.msrb.gmra.mxu0 %v2106_v37  ;;  %1000 = vmatpush.msrb.mxu3 %v1642_v2  ;;  %v740_v2 = vpop.permute.xlu1 %739 }
 0x12b   :  { %1020 = vmatpush.msrb.mxu2 %v1644_v3  ;;  %1040 = vmatpush.msrb.mxu0 %v1647_v4  ;;  %v719_v3 = vadd.f32 %v718_v59, %v713_v50  ;;  %v730_v4 = vmul.f32 %v728_v56, %v539_v48  ;;  %v2537_v56 = vld [vmem:[#allocation18_spill] sm:$0xff]  ;;  %v2548_v50 = vld [vmem:[#allocation29_spill] sm:$0xff]  ;;  %v2550_v48 = vld [vmem:[#allocation31_spill] sm:$0xff] }
 0x12c   :  { %1001 = vmatpush.msrb.mxu3 %v1653_v6  ;;  %v2549_v59 = vld [vmem:[#allocation30_spill] sm:$0xff] }
 0x12d   :  { %1021 = vmatpush.msrb.mxu2 %v1655_v7  ;;  %1041 = vmatpush.msrb.mxu0 %v1658_v8  ;;  %v725_v6 = vadd.f32 %v724_v51, %v719_v3  ;;  %v736_v7 = vmul.f32 %v734_v45, %v579_v54  ;;  %v659_v8 = vadd.f32 %v658_v32, %v638_v46  ;;  %v2534_v46 = vld [vmem:[#allocation15_spill] sm:$0xff]  ;;  %v2535_v32 = vld [vmem:[#allocation16_spill] sm:$0xff]  ;;  %v1421_v45 = vld [vmem:[#allocation2 + $0x6c8] sm:$0xff] }
 0x12e   :  { %1002 = vmatpush.msrb.mxu3 %v1662_v10  ;;  %v746_v10 = vpop.permute.xlu2 %745  ;;  %v2552_v51 = vld [vmem:[#allocation33_spill] sm:$0xff]  ;;  %v2553_v54 = vld [vmem:[#allocation34_spill] sm:$0xff]  ;;  %v2554_v3 = vld [vmem:[#allocation35_spill] sm:$0xff] }
 0x12f   :  { %1022 = vmatpush.msrb.mxu2 %v1671_v12  ;;  %1042 = vmatpush.msrb.mxu0 %v1674_v13  ;;  %v731_v12 = vadd.f32 %v730_v4, %v725_v6  ;;  %v742_v13 = vmul.f32 %v740_v2, %v619_v39  ;;  %v1423_v2 = vld [vmem:[#allocation2 + $0x638] sm:$0xff]  ;;  %v2556_v39 = vld [vmem:[#allocation37_spill] sm:$0xff]  ;;  %v1424_v6 = vld [vmem:[#allocation2 + $0x5f0] sm:$0xff] }
 0x130   :  { %1003 = vmatpush.msrb.mxu3 %v1678_v16  ;;  %v2555_v4 = vld [vmem:[#allocation36_spill] sm:$0xff] }
 0x131   :  { %1023 = vmatpush.msrb.mxu2 %v1680_v17  ;;  %1043 = vmatpush.msrb.mxu0 %v1684_v18  ;;  %v737_v16 = vadd.f32 %v736_v7, %v731_v12  ;;  %v748_v17 = vmul.f32 %v746_v10, %v659_v8  ;;  %v756_v7 = vld [vmem:[%s2308_s6] sm:$0xff]  ;;  %v2557_v8 = vld [vmem:[#allocation38_spill] sm:$0xff]  ;;  %v2558_v10 = vld [vmem:[#allocation39_spill] sm:$0xff] }
 0x132   :  { %1004 = vmatpush.msrb.mxu3 %v1687_v20  ;;  %956 = vmatmul.f32.vlgmr.msra.gmra.mxu2 %v2108_v40  ;;  %v2559_v12 = vld [vmem:[#allocation40_spill] sm:$0xff] }
 0x133   :  { %1024 = vmatpush.msrb.mxu2 %v1689_v21  ;;  %1044 = vmatpush.msrb.mxu0 %v1693_v22  ;;  %v752_v21 = vpop.permute.xlu1 %751  ;;  %v743_v22 = vadd.f32 %v742_v13, %v737_v16  ;;  %v1425_v13 = vld [vmem:[#allocation2 + $0x5a8] sm:$0xff]  ;;  %v2560_v16 = vld [vmem:[#allocation41_spill] sm:$0xff] }
 0x134   :  { %1005 = vmatpush.msrb.mxu3 %v1696_v24  ;;  %976 = vmatmul.f32.vlgmr.msra.gmra.mxu0 %v2106_v37 }
 0x135   :  { %1025 = vmatpush.msrb.mxu2 %v1700_v25  ;;  %1045 = vmatpush.msrb.mxu0 %v1703_v26  ;;  %v749_v24 = vadd.f32 %v748_v17, %v743_v22  ;;  %v2561_v17 = vld [vmem:[#allocation42_spill] sm:$0xff]  ;;  %v2564_v22 = vld [vmem:[#allocation45_spill] sm:$0xff] }
 0x136   :  { %1006 = vmatpush.msrb.mxu3 %v1707_v29  ;;  %v2524_v29 = vld [vmem:[#allocation5_spill] sm:$0xff] }
 0x137   :  { %1026 = vmatpush.msrb.mxu2 %v1711_v30  ;;  %1046 = vmatpush.msrb.mxu0 %v1713_v31  ;;  %v1414_v30 = vld [vmem:[#allocation2 + $0x8c0] sm:$0xff]  ;;  %v2525_v31 = vld [vmem:[#allocation6_spill] sm:$0xff] }
 0x138   :  { %v678_v18 = vpop.f32.mrf.mxu0  ;;  %v698_v20 = vpop.f32.mrf.mxu1  ;;  %1007 = vmatpush.msrb.mxu3 %v1718_v34  ;;  %v2526_v34 = vld [vmem:[#allocation7_spill] sm:$0xff] }
 0x139   :  { %v699_v62 = vadd.f32 %v698_v20, %v678_v18  ;;  %1027 = vmatpush.msrb.mxu2 %v1720_v35  ;;  %1047 = vmatpush.msrb.mxu0 %v1724_v38  ;;  %v2527_v35 = vld [vmem:[#allocation8_spill] sm:$0xff]  ;;  %v2562_v18 = vld [vmem:[#allocation43_spill] sm:$0xff]  ;;  %v1426_v20 = vld [vmem:[#allocation2 + $0x560] sm:$0xff] }
 0x13a   :  { %1008 = vmatpush.msrb.mxu3 %v1727_v42  ;;  %v1415_v38 = vld [vmem:[#allocation2 + $0x878] sm:$0xff]  ;;  %v2528_v42 = vld [vmem:[#allocation9_spill] sm:$0xff] }
 0x13b   :  { %v754_v25 = vmul.f32 %v752_v21, %v699_v62  ;;  %1028 = vmatpush.msrb.mxu2 %v1729_v43  ;;  %1048 = vmatpush.msrb.mxu0 %v1733_v47  ;;  %v2529_v43 = vld [vmem:[#allocation10_spill] sm:$0xff]  ;;  %v2530_v47 = vld [vmem:[#allocation11_spill] sm:$0xff]  ;;  %v2563_v21 = vld [vmem:[#allocation44_spill] sm:$0xff] }
 0x13c   :  { %1009 = vmatpush.msrb.mxu3 %v1736_v57  ;;  %v1416_v57 = vld [vmem:[#allocation2 + $0x830] sm:$0xff]  ;;  %v2565_v62 = vld [vmem:[#allocation46_spill] sm:$0xff] }
 0x13d   :  { %v755_v26 = vadd.f32 %v754_v25, %v749_v24  ;;  %1029 = vmatpush.msrb.mxu2 %v1740_v61  ;;  %1049 = vmatpush.msrb.mxu0 %v1742_v1  ;;  %v2531_v61 = vld [vmem:[#allocation12_spill] sm:$0xff]  ;;  %v2532_v1 = vld [vmem:[#allocation13_spill] sm:$0xff]  ;;  %v2566_v25 = vld [vmem:[#allocation47_spill] sm:$0xff] }
 0x13e   :  { %1010 = vmatpush.msrb.mxu3 %v2524_v29  ;;  %v1427_v24 = vld [vmem:[#allocation2 + $0x518] sm:$0xff]  ;;  %v2200_v29 = vld [vmem:[%s2305_s3] sm:$0xff] }
 0x13f   :  { %782 = vmatpush.msrb.mxu1 %v755_v26  ;;  %1030 = vmatpush.msrb.mxu2 %v2525_v31  ;;  %v2567_v26 = vld [vmem:[#allocation48_spill] sm:$0xff]  ;;  %v1428_v31 = vld [vmem:[#allocation2 + $0x4d0] sm:$0xff] }
 0x140   :  { %1050 = vmatpush.msrb.mxu0 %v2526_v34  ;;  %1011 = vmatpush.msrb.mxu3 %v2527_v35  ;;  %v2569_v34 = vld [vmem:[#allocation50_spill] sm:$0xff]  ;;  %v2570_v35 = vld [vmem:[#allocation51_spill] sm:$0xff] }
 0x141   :  { %900 = vmatpush.msra.mxu1 %v1414_v30  ;;  %1031 = vmatpush.msrb.mxu2 %v2528_v42  ;;  %v2568_v30 = vld [vmem:[#allocation49_spill] sm:$0xff]  ;;  %v1429_v42 = vld [vmem:[#allocation2 + $0x488] sm:$0xff] }
 0x142   :  { %1051 = vmatpush.msrb.mxu0 %v2529_v43  ;;  %1012 = vmatpush.msrb.mxu3 %v2530_v47  ;;  %v2572_v43 = vld [vmem:[#allocation53_spill] sm:$0xff]  ;;  %v2573_v47 = vld [vmem:[#allocation54_spill] sm:$0xff] }
 0x143   :  { %901 = vmatpush.msra.mxu1 %v1415_v38  ;;  %1032 = vmatpush.msrb.mxu2 %v2531_v61  ;;  %v2571_v38 = vld [vmem:[#allocation52_spill] sm:$0xff]  ;;  %v2574_v61 = vld [vmem:[#allocation55_spill] sm:$0xff] }
 0x144   :  { %1052 = vmatpush.msrb.mxu0 %v2532_v1  ;;  %1013 = vmatpush.msrb.mxu3 %v2533_v63  ;;  %v2575_v1 = vld [vmem:[#allocation56_spill] sm:$0xff]  ;;  %v2576_v63 = vld [vmem:[#allocation57_spill] sm:$0xff] }
 0x145   :  { %902 = vmatpush.msra.mxu1 %v1416_v57  ;;  %1033 = vmatpush.msrb.mxu2 %v2534_v46  ;;  %v1430_v57 = vld [vmem:[#allocation2 + $0x8d0] sm:$0xff]  ;;  %v2577_v46 = vld [vmem:[#allocation58_spill] sm:$0xff] }
 0x146   :  { %1053 = vmatpush.msrb.mxu0 %v2535_v32  ;;  %1014 = vmatpush.msrb.mxu3 %v2536_v52  ;;  %v2578_v32 = vld [vmem:[#allocation59_spill] sm:$0xff]  ;;  %v1432_v52 = vld [vmem:[#allocation2 + $0x840] sm:$0xff] }
 0x147   :  { %903 = vmatpush.msra.mxu1 %v1417_v5  ;;  %1034 = vmatpush.msrb.mxu2 %v2537_v56  ;;  %v1431_v5 = vld [vmem:[#allocation2 + $0x888] sm:$0xff]  ;;  %v2580_v56 = vld [vmem:[#allocation61_spill] sm:$0xff] }
 0x148   :  { %1054 = vmatpush.msrb.mxu0 %v2538_v60  ;;  %1015 = vmatpush.msrb.mxu3 %v2539_v49  ;;  %v1433_v60 = vld [vmem:[#allocation2 + $0x7f8] sm:$0xff]  ;;  %v2581_v49 = vld [vmem:[#allocation62_spill] sm:$0xff] }
 0x149   :  { %904 = vmatpush.msra.mxu1 %v1418_v53  ;;  %1035 = vmatpush.msrb.mxu2 %v2540_v14  ;;  %v2579_v53 = vld [vmem:[#allocation60_spill] sm:$0xff]  ;;  %v2583_v14 = vmov 2  }
 0x14a   :  { %1055 = vmatpush.msrb.mxu0 %v2541_v15  ;;  %936 = vmatmul.f32.vlgmr.msra.gmra.mxu3 %v2106_v37  ;;  %v2584_v15 = vld [vmem:[#allocation65_spill] sm:$0xff] }
 0x14b   :  { %905 = vmatpush.msra.mxu1 %v1419_v0  ;;  %1080 = vmatpush.msra.mxu3 %v2542_v11  ;;  %v2582_v0 = vld [vmem:[#allocation63_spill] sm:$0xff]  ;;  %v2585_v11 = vld [vmem:[#allocation66_spill] sm:$0xff] }
 0x14c   :  { %1100 = vmatpush.msra.mxu2 %v2543_v33  ;;  %1120 = vmatpush.msra.mxu0 %v2544_v9  ;;  %v2586_v33 = vld [vmem:[#allocation67_spill] sm:$0xff]  ;;  %v1435_v9 = vld [vmem:[#allocation2 + $0x768] sm:$0xff] }
 0x14d   :  { %906 = vmatpush.msra.mxu1 %v1420_v36  ;;  %1081 = vmatpush.msra.mxu3 %v2545_v41  ;;  %v2587_v36 = vld [vmem:[#allocation69_spill] sm:$0xff]  ;;  %v2588_v41 = vld [vmem:[#allocation70_spill] sm:$0xff] }
 0x14e   :  { %1101 = vmatpush.msra.mxu2 %v2546_v44  ;;  %1121 = vmatpush.msra.mxu0 %v2547_v58  ;;  %v2589_v44 = vld [vmem:[#allocation71_spill] sm:$0xff]  ;;  %v2590_v58 = vld [vmem:[#allocation73_spill] sm:$0xff] }
 0x14f   :  { %907 = vmatpush.msra.mxu1 %v1421_v45  ;;  %1082 = vmatpush.msra.mxu3 %v2548_v50  ;;  %v2591_v45 = vld [vmem:[#allocation74_spill] sm:$0xff]  ;;  %v1436_v50 = vld [vmem:[#allocation2 + $0x720] sm:$0xff] }
 0x150   :  { %1102 = vmatpush.msra.mxu2 %v2549_v59  ;;  %1122 = vmatpush.msra.mxu0 %v2550_v48  ;;  %v2592_v59 = vmov 4   ;;  %v2593_v48 = vld [vmem:[#allocation75_spill] sm:$0xff] }
 0x151   :  { %908 = vmatpush.msra.mxu1 %v1422_v55  ;;  %1083 = vmatpush.msra.mxu3 %v2551_v23  ;;  %v2594_v55 = vld [vmem:[#allocation76_spill] sm:$0xff] }
 0x152   :  { %1103 = vmatpush.msra.mxu2 %v2552_v51  ;;  %1123 = vmatpush.msra.mxu0 %v2553_v54  ;;  %v1437_v23 = vld [vmem:[#allocation2 + $0x6d8] sm:$0xff]  ;;  %v2595_v51 = vld [vmem:[#allocation77_spill] sm:$0xff]  ;;  %v2596_v54 = vld [vmem:[#allocation78_spill] sm:$0xff] }
 0x153   :  { %909 = vmatpush.msra.mxu1 %v1423_v2  ;;  %1084 = vmatpush.msra.mxu3 %v2554_v3  ;;  %v2597_v2 = vmov 5   ;;  %v1438_v3 = vld [vmem:[#allocation2 + $0x690] sm:$0xff] }
 0x154   :  { %1104 = vmatpush.msra.mxu2 %v2555_v4  ;;  %1124 = vmatpush.msra.mxu0 %v2556_v39  ;;  %v2598_v4 = vld [vmem:[#allocation79_spill] sm:$0xff]  ;;  %v2599_v39 = vld [vmem:[#allocation80_spill] sm:$0xff] }
 0x155   :  { %910 = vmatpush.msra.mxu1 %v1424_v6  ;;  %1085 = vmatpush.msra.mxu3 %v2557_v8  ;;  %v1439_v6 = vld [vmem:[#allocation2 + $0x648] sm:$0xff] }
 0x156   :  { %1105 = vmatpush.msra.mxu2 %v2558_v10  ;;  %1125 = vmatpush.msra.mxu0 %v2559_v12  ;;  %v2601_v8 = vld [vmem:[#allocation82_spill] sm:$0xff]  ;;  %v1440_v10 = vld [vmem:[#allocation2 + $0x600] sm:$0xff]  ;;  %v2602_v12 = vld [vmem:[#allocation83_spill] sm:$0xff] }
 0x157   :  { %911 = vmatpush.msra.mxu1 %v1425_v13  ;;  %1086 = vmatpush.msra.mxu3 %v2560_v16  ;;  %v2603_v13 = vld [vmem:[#allocation84_spill] sm:$0xff] }
 0x158   :  { %1298 = vmatmul.msk.f32.vlgmr.msrb.gmra.mxu1 %vm763_vm0, %v756_v7  ;;  %1106 = vmatpush.msra.mxu2 %v2561_v17  ;;  %v2600_v7 = vld [vmem:[#allocation81_spill] sm:$0xff]  ;;  %v1441_v16 = vld [vmem:[#allocation2 + $0x5b8] sm:$0xff] }
 0x159   :  { %1126 = vmatpush.msra.mxu0 %v2562_v18  ;;  %912 = vmatpush.msra.mxu1 %v1426_v20  ;;  %v2604_v17 = vld [vmem:[#allocation85_spill] sm:$0xff]  ;;  %v2605_v18 = vmov 6   ;;  %v2606_v20 = vld [vmem:[#allocation86_spill] sm:$0xff] }
 0x15a   :  { %1087 = vmatpush.msra.mxu3 %v2563_v21  ;;  %1107 = vmatpush.msra.mxu2 %v2564_v22  ;;  %v1442_v21 = vld [vmem:[#allocation2 + $0x570] sm:$0xff]  ;;  %v2607_v22 = vmov 7  }
 0x15b   :  { %1127 = vmatpush.msra.mxu0 %v2565_v62  ;;  %913 = vmatpush.msra.mxu1 %v1427_v24  ;;  %v2608_v62 = vld [vmem:[#allocation87_spill] sm:$0xff]  ;;  %v1443_v24 = vld [vmem:[#allocation2 + $0x528] sm:$0xff] }
 0x15c   :  { %1016 = vmatmul.f32.vlgmr.msrb.gmra.mxu3 %v2106_v37  ;;  %1036 = vmatmul.f32.vlgmr.msrb.gmra.mxu2 %v2108_v40 }
 0x15d   :  { %1056 = vmatmul.f32.vlgmr.msrb.gmra.mxu0 %v2106_v37  ;;  %1088 = vmatpush.msra.mxu3 %v2566_v25  ;;  %v2609_v25 = vld [vmem:[#allocation88_spill] sm:$0xff] }
 0x15e   :  { %1108 = vmatpush.msra.mxu2 %v2567_v26  ;;  %1128 = vmatpush.msra.mxu0 %v2568_v30  ;;  %v2610_v26 = vld [vmem:[#allocation89_spill] sm:$0xff] }
 0x15f   :  { %914 = vmatpush.msra.mxu1 %v1428_v31  ;;  %1089 = vmatpush.msra.mxu3 %v2569_v34  ;;  %v1444_v30 = vld [vmem:[#allocation2 + $0x4e0] sm:$0xff]  ;;  %v2611_v31 = vld [vmem:[#allocation90_spill] sm:$0xff]  ;;  %v2612_v34 = vld [vmem:[#allocation91_spill] sm:$0xff] }
 0x160   :  { %1109 = vmatpush.msra.mxu2 %v2570_v35  ;;  %1129 = vmatpush.msra.mxu0 %v2571_v38  ;;  %v2613_v35 = vmov 8   ;;  %v1445_v38 = vld [vmem:[#allocation2 + $0x498] sm:$0xff] }
 0x161   :  { %1203 = vperm.xlu2 %1325, %v2200_v29   ;;  %915 = vmatpush.msra.mxu1 %v1429_v42  ;;  %v2615_v42 = vld [vmem:[#allocation93_spill] sm:$0xff] }
 0x162   :  { %1090 = vmatpush.msra.mxu3 %v2572_v43  ;;  %916 = vmatmul.f32.vlgmr.msra.gmra.mxu1 %v2108_v40  ;;  %v757_v43 = vld [vmem:[%s2309_s7] sm:$0xff] }
 0x163   :  { %1110 = vmatpush.msra.mxu2 %v2573_v47  ;;  %980 = vmatpush.msrb.mxu1 %v1430_v57  ;;  %v1446_v47 = vld [vmem:[#allocation2 + $0x8e0] sm:$0xff]  ;;  %v2616_v57 = vld [vmem:[#allocation94_spill] sm:$0xff] }
 0x164   :  { %1130 = vmatpush.msra.mxu0 %v2574_v61  ;;  %1091 = vmatpush.msra.mxu3 %v2575_v1  ;;  %v2617_v61 = vld [vmem:[#allocation95_spill] sm:$0xff]  ;;  %v1447_v1 = vld [vmem:[#allocation2 + $0x898] sm:$0xff] }
 0x165   :  { %1111 = vmatpush.msra.mxu2 %v2576_v63  ;;  %981 = vmatpush.msrb.mxu1 %v1431_v5  ;;  %v2618_v63 = vld [vmem:[#allocation96_spill] sm:$0xff]  ;;  %v2619_v5 = vld [vmem:[#allocation97_spill] sm:$0xff] }
 0x166   :  { %1131 = vmatpush.msra.mxu0 %v1910_v19  ;;  %1092 = vmatpush.msra.mxu3 %v2577_v46  ;;  %v1434_v19 = vld [vmem:[#allocation2 + $0x7b0] sm:$0xff] }
 0x167   :  { %1112 = vmatpush.msra.mxu2 %v2578_v32  ;;  %982 = vmatpush.msrb.mxu1 %v1432_v52  ;;  %v1448_v46 = vld [vmem:[#allocation2 + $0x850] sm:$0xff]  ;;  %v2620_v32 = vld [vmem:[#allocation98_spill] sm:$0xff] }
 0x168   :  { %1132 = vmatpush.msra.mxu0 %v2579_v53  ;;  %1208 = vperm.xlu1 %1326, %v2200_v29   ;;  %v2621_v52 = vld [vmem:[#allocation99_spill] sm:$0xff]  ;;  %v1449_v53 = vld [vmem:[#allocation2 + $0x808] sm:$0xff] }
 0x169   :  { %1093 = vmatpush.msra.mxu3 %v2580_v56  ;;  %983 = vmatpush.msrb.mxu1 %v1433_v60  ;;  %v2622_v56 = vld [vmem:[#allocation100_spill] sm:$0xff]  ;;  %v2623_v60 = vld [vmem:[#allocation101_spill] sm:$0xff] }
 0x16a   :  { %1113 = vmatpush.msra.mxu2 %v2581_v49  ;;  %1133 = vmatpush.msra.mxu0 %v2582_v0  ;;  %v1450_v49 = vld [vmem:[#allocation2 + $0x7c0] sm:$0xff]  ;;  %v2624_v0 = vld [vmem:[#allocation102_spill] sm:$0xff] }
 0x16b   :  { %1327 = vset.pattern.permute.xlu2 %v2583_v14  ;;  %984 = vmatpush.msrb.mxu1 %v1434_v19  ;;  %v2625_v14 = vld [vmem:[#allocation103_spill] sm:$0xff]  ;;  %v1451_v19 = vld [vmem:[#allocation2 + $0x778] sm:$0xff] }
 0x16c   :  { %1214 = vperm.xlu2 %1327, %v2200_v29   ;;  %1094 = vmatpush.msra.mxu3 %v2584_v15  ;;  %v1453_v15 = vld [vmem:[#allocation2 + $0x6e8] sm:$0xff] }
 0x16d   :  { %1114 = vmatpush.msra.mxu2 %v2585_v11  ;;  %1134 = vmatpush.msra.mxu0 %v2586_v33  ;;  %v1454_v11 = vld [vmem:[#allocation2 + $0x6a0] sm:$0xff]  ;;  %v1455_v33 = vld [vmem:[#allocation2 + $0x658] sm:$0xff] }
 0x16e   :  { %985 = vmatpush.msrb.mxu1 %v1435_v9  ;;  %1095 = vmatpush.msra.mxu3 %v2587_v36  ;;  %v1456_v9 = vld [vmem:[#allocation2 + $0x610] sm:$0xff]  ;;  %v1457_v36 = vld [vmem:[#allocation2 + $0x5c8] sm:$0xff] }
 0x16f   :  { %1115 = vmatpush.msra.mxu2 %v2588_v41  ;;  %1135 = vmatpush.msra.mxu0 %v2589_v44  ;;  %v1458_v41 = vld [vmem:[#allocation2 + $0x580] sm:$0xff]  ;;  %v1459_v44 = vld [vmem:[#allocation2 + $0x538] sm:$0xff] }
 0x170   :  { %1096 = vmatmul.f32.vlgmr.msra.gmra.mxu3 %v2106_v37  ;;  %1116 = vmatmul.f32.vlgmr.msra.gmra.mxu2 %v2108_v40 }
 0x171   :  { %1136 = vmatmul.f32.vlgmr.msra.gmra.mxu0 %v2106_v37  ;;  %1160 = vmatpush.msrb.mxu3 %v2590_v58  ;;  %v1461_v58 = vld [vmem:[#allocation2 + $0x4a8] sm:$0xff] }
 0x172   :  { %1180 = vmatpush.msrb.mxu2 %v2591_v45  ;;  %986 = vmatpush.msrb.mxu1 %v1436_v50  ;;  %v1463_v45 = vld [vmem:[#allocation2 + $0x8a8] sm:$0xff]  ;;  %v1464_v50 = vld [vmem:[#allocation2 + $0x860] sm:$0xff] }
 0x173   :  { %1329 = vset.pattern.permute.xlu1 %v2592_v59  ;;  %1161 = vmatpush.msrb.mxu3 %v2593_v48  ;;  %v1465_v59 = vld [vmem:[#allocation2 + $0x818] sm:$0xff]  ;;  %v1466_v48 = vld [vmem:[#allocation2 + $0x7d0] sm:$0xff] }
 0x174   :  { %1181 = vmatpush.msrb.mxu2 %v2594_v55  ;;  %987 = vmatpush.msrb.mxu1 %v1437_v23  ;;  %v1467_v55 = vld [vmem:[#allocation2 + $0x788] sm:$0xff]  ;;  %v1468_v23 = vld [vmem:[#allocation2 + $0x740] sm:$0xff] }
 0x175   :  { %1226 = vperm.xlu1 %1329, %v2200_v29   ;;  %1162 = vmatpush.msrb.mxu3 %v2595_v51  ;;  %v1469_v51 = vld [vmem:[#allocation2 + $0x6f8] sm:$0xff] }
 0x176   :  { %1182 = vmatpush.msrb.mxu2 %v2596_v54  ;;  %1330 = vset.pattern.permute.xlu2 %v2597_v2  ;;  %v1470_v54 = vld [vmem:[#allocation2 + $0x6b0] sm:$0xff]  ;;  %v1471_v2 = vld [vmem:[#allocation2 + $0x668] sm:$0xff] }
 0x177   :  { %988 = vmatpush.msrb.mxu1 %v1438_v3  ;;  %1232 = vperm.xlu2 %1330, %v2200_v29   ;;  %v1472_v3 = vld [vmem:[#allocation2 + $0x620] sm:$0xff] }
 0x178   :  { %1163 = vmatpush.msrb.mxu3 %v2598_v4  ;;  %1183 = vmatpush.msrb.mxu2 %v2599_v39  ;;  %v1473_v4 = vld [vmem:[#allocation2 + $0x5d8] sm:$0xff]  ;;  %v1474_v39 = vld [vmem:[#allocation2 + $0x590] sm:$0xff] }
 0x179   :  { %989 = vmatpush.msrb.mxu1 %v1439_v6  ;;  %1220 = vperm.xlu0 %1328, %v2200_v29   ;;  %v2626_v6 = vld [vmem:[#allocation64_spill] sm:$0xff] }
 0x17a   :  { %1164 = vmatpush.msrb.mxu3 %v2600_v7  ;;  %1184 = vmatpush.msrb.mxu2 %v2601_v8  ;;  %v2627_v7 = vld [vmem:[#allocation68_spill] sm:$0xff] }
 0x17b   :  { %990 = vmatpush.msrb.mxu1 %v1440_v10  ;;  %v2628_v8 = vld [vmem:[#allocation72_spill] sm:$0xff] }
 0x17c   :  { %1165 = vmatpush.msrb.mxu3 %v2602_v12  ;;  %1185 = vmatpush.msrb.mxu2 %v2603_v13 }
 0x17d   :  { %991 = vmatpush.msrb.mxu1 %v1441_v16  ;;  %1331 = vset.pattern.permute.xlu1 %v2605_v18 }
 0x17e   :  { %1166 = vmatpush.msrb.mxu3 %v2604_v17  ;;  %1186 = vmatpush.msrb.mxu2 %v2606_v20 }
 0x17f   :  { %992 = vmatpush.msrb.mxu1 %v1442_v21  ;;  %1332 = vset.pattern.permute.xlu2 %v2607_v22  ;;  %v1256_v22 = vld [vmem:[%s2311_s9] sm:$0xff] }
 0x180   :  { %1167 = vmatpush.msrb.mxu3 %v2608_v62  ;;  %1187 = vmatpush.msrb.mxu2 %v2025_v27  ;;  %v2614_v27 = vld [vmem:[#allocation92_spill] sm:$0xff] }
 0x181   :  { %1244 = vperm.xlu2 %1332, %v2200_v29   ;;  %993 = vmatpush.msrb.mxu1 %v1443_v24 }
 0x182   :  { %1168 = vmatpush.msrb.mxu3 %v2609_v25  ;;  %1188 = vmatpush.msrb.mxu2 %v2610_v26 }
 0x183   :  { %1238 = vperm.xlu1 %1331, %v2200_v29   ;;  %994 = vmatpush.msrb.mxu1 %v1444_v30 }
 0x184   :  { %1169 = vmatpush.msrb.mxu3 %v2611_v31  ;;  %1189 = vmatpush.msrb.mxu2 %v2612_v34 }
 0x185   :  { %1333 = vset.pattern.permute.xlu0 %v2613_v35  ;;  %995 = vmatpush.msrb.mxu1 %v1445_v38 }
 0x186   :  { %1170 = vmatpush.msrb.mxu3 %v2614_v27  ;;  %996 = vmatmul.f32.vlgmr.msrb.gmra.mxu1 %v2108_v40 }
 0x187   :  { %1190 = vmatpush.msrb.mxu2 %v2615_v42  ;;  %1060 = vmatpush.msra.mxu1 %v1446_v47 }
 0x188   :  { %1171 = vmatpush.msrb.mxu3 %v2616_v57  ;;  %1250 = vperm.xlu0 %1333, %v2200_v29   ;;  %v1452_v29 = vld [vmem:[#allocation2 + $0x730] sm:$0xff] }
 0x189   :  { %1191 = vmatpush.msrb.mxu2 %v2617_v61  ;;  %1335 = vset.pattern.permute.xlu2 %v2500_v28 }
 0x18a   :  { %1061 = vmatpush.msra.mxu1 %v1447_v1  ;;  %760 = vperm.xlu2 %1335, %v757_v43  }
 0x18b   :  { %1172 = vmatpush.msrb.mxu3 %v2618_v63  ;;  %1192 = vmatpush.msrb.mxu2 %v2619_v5 }
 0x18c   :  { %1062 = vmatpush.msra.mxu1 %v1448_v46  ;;  %1334 = vset.pattern.permute.xlu1 %v2500_v28 }
 0x18d   :  { %1173 = vmatpush.msrb.mxu3 %v2620_v32  ;;  %1193 = vmatpush.msrb.mxu2 %v2621_v52 }
 0x18e   :  { %1063 = vmatpush.msra.mxu1 %v1449_v53  ;;  %1259 = vperm.xlu1 %1334, %v1256_v22  }
 0x18f   :  { %1174 = vmatpush.msrb.mxu3 %v2622_v56  ;;  %1194 = vmatpush.msrb.mxu2 %v2623_v60 }
 0x190   :  { %1064 = vmatpush.msra.mxu1 %v1450_v49  ;;  %1336 = vset.pattern.permute.xlu0 %v2500_v28  ;;  %v1462_v28 = vld [vmem:[#allocation2 + $0x8f0] sm:$0xff] }
 0x191   :  { %1175 = vmatpush.msrb.mxu3 %v2624_v0  ;;  %1195 = vmatpush.msrb.mxu2 %v2625_v14 }
 0x192   :  { %1065 = vmatpush.msra.mxu1 %v1451_v19  ;;  %1176 = vmatmul.f32.vlgmr.msrb.gmra.mxu3 %v2106_v37  ;;  %v1460_v37 = vld [vmem:[#allocation2 + $0x4f0] sm:$0xff] }
 0x193   :  { %1196 = vmatmul.f32.vlgmr.msrb.gmra.mxu2 %v2108_v40 }
 0x194   :  { %1066 = vmatpush.msra.mxu1 %v1452_v29 }
 0x196   :  { %1067 = vmatpush.msra.mxu1 %v1453_v15 }
 0x198   :  { %1068 = vmatpush.msra.mxu1 %v1454_v11 }
 0x19a   :  { %1069 = vmatpush.msra.mxu1 %v1455_v33 }
 0x19c   :  { %1070 = vmatpush.msra.mxu1 %v1456_v9 }
 0x19e   :  { %1071 = vmatpush.msra.mxu1 %v1457_v36 }
 0x1a0   :  { %1072 = vmatpush.msra.mxu1 %v1458_v41 }
 0x1a2   :  { %1073 = vmatpush.msra.mxu1 %v1459_v44 }
 0x1a4   :  { %1074 = vmatpush.msra.mxu1 %v1460_v37 }
 0x1a6   :  { %1075 = vmatpush.msra.mxu1 %v1461_v58 }
 0x1a7   :  { %1076 = vmatmul.f32.vlgmr.msra.gmra.mxu1 %v2108_v40  ;;  %v897_v16 = vpop.f32.mrf.mxu0 }
 0x1a8   :  { %1140 = vmatpush.msrb.mxu1 %v1462_v28 }
 0x1aa   :  { %1141 = vmatpush.msrb.mxu1 %v1463_v45 }
 0x1ac   :  { %1142 = vmatpush.msrb.mxu1 %v1464_v50  ;;  %v877_v10 = vpop.f32.mrf.mxu2  ;;  %v857_v12 = vpop.f32.mrf.mxu3 }
 0x1ad   :  { %v878_v62 = vadd.f32 %v877_v10, %v857_v12 }
 0x1ae   :  { %1143 = vmatpush.msrb.mxu1 %v1465_v59 }
 0x1b0   :  { %1144 = vmatpush.msrb.mxu1 %v1466_v48 }
 0x1b1   :  { %v977_v24 = vpop.f32.mrf.mxu0 }
 0x1b2   :  { %1145 = vmatpush.msrb.mxu1 %v1467_v55 }
 0x1b4   :  { %1146 = vmatpush.msrb.mxu1 %v1468_v23 }
 0x1b5   :  { %v957_v18 = vpop.f32.mrf.mxu2 }
 0x1b6   :  { %1147 = vmatpush.msrb.mxu1 %v1469_v51  ;;  %v1255_v51 = vld [vmem:[%s2310_s8] sm:$0xff] }
 0x1b8   :  { %1148 = vmatpush.msrb.mxu1 %v1470_v54 }
 0x1ba   :  { %1149 = vmatpush.msrb.mxu1 %v1471_v2 }
 0x1bb   :  { %v1204_v17 = vpop.permute.xlu2 %1203 }
 0x1bc   :  { %1150 = vmatpush.msrb.mxu1 %v1472_v3  ;;  %v1206_v35 = vmul.f32 %v1204_v17, %v878_v62 }
 0x1be   :  { %1151 = vmatpush.msrb.mxu1 %v1473_v4 }
 0x1c0   :  { %1152 = vmatpush.msrb.mxu1 %v1474_v39 }
 0x1c2   :  { %1153 = vmatpush.msrb.mxu1 %v2626_v6 }
 0x1c4   :  { %1154 = vmatpush.msrb.mxu1 %v2627_v7 }
 0x1c6   :  { %1155 = vmatpush.msrb.mxu1 %v2628_v8 }
 0x1c7   :  { %1156 = vmatmul.f32.vlgmr.msrb.gmra.mxu1 %v2108_v40  ;;  %v1215_v40 = vpop.permute.xlu2 %1214 }
 0x1cd   :  { %v937_v20 = vpop.f32.mrf.mxu3 }
 0x1ce   :  { %v958_v38 = vadd.f32 %v957_v18, %v937_v20 }
 0x1d0   :  { %v1217_v47 = vmul.f32 %v1215_v40, %v958_v38 }
 0x1d1   :  { %v1233_v60 = vpop.permute.xlu2 %1232 }
 0x1d5   :  { %v2289_v13 = vpop.f32.mrf.mxu1 }
 0x1da   :  { %v1209_v25 = vpop.permute.xlu1 %1208  ;;  %v1057_v1 = vpop.f32.mrf.mxu0 }
 0x1db   :  { %v1245_v28 = vpop.permute.xlu2 %1244 }
 0x1df   :  { %v917_v21 = vpop.f32.mrf.mxu1  ;;  %v1017_v31 = vpop.f32.mrf.mxu3 }
 0x1e0   :  { %v918_v26 = vadd.f32 %v917_v21, %v897_v16  ;;  %v1037_v34 = vpop.f32.mrf.mxu2 }
 0x1e1   :  { %v1038_v52 = vadd.f32 %v1037_v34, %v1017_v31 }
 0x1e2   :  { %v1211_v27 = vmul.f32 %v1209_v25, %v918_v26 }
 0x1e4   :  { %v1212_v57 = vadd.f32 %v1211_v27, %v1206_v35  ;;  %v761_v39 = vpop.permute.xlu2 %760 }
 0x1e5   :  { %v785_v6 = vadd.f32 %v2289_v13, %v761_v39 }
 0x1e6   :  { %v1218_v53 = vadd.f32 %v1217_v47, %v1212_v57 }
 0x1e7   :  { %v1227_v63 = vpop.permute.xlu1 %1226  ;;  %v787_v7 = vmax.f32 %v785_v6, 0.0 }
 0x1e8   :  { %v1229_v0 = vmul.f32 %v1227_v63, %v1038_v52 }
 0x1eb   :  { %v1221_v43 = vpop.permute.xlu0 %1220 }
 0x1ee   :  { %v1137_v36 = vpop.f32.mrf.mxu0 }
 0x1f3   :  { %v1097_v46 = vpop.f32.mrf.mxu3  ;;  %v1117_v32 = vpop.f32.mrf.mxu2 }
 0x1f4   :  { %v1118_v19 = vadd.f32 %v1117_v32, %v1097_v46 }
 0x1f5   :  { %v1239_v29 = vpop.permute.xlu1 %1238 }
 0x1f6   :  { %v1241_v44 = vmul.f32 %v1239_v29, %v1118_v19 }
 0x1fa   :  { %v1251_v45 = vpop.permute.xlu0 %1250 }
 0x200   :  { %v1260_v54 = vpop.permute.xlu1 %1259 }
 0x203   :  { %v997_v30 = vpop.f32.mrf.mxu1 }
 0x204   :  { %v998_v42 = vadd.f32 %v997_v30, %v977_v24 }
 0x206   :  { %v1223_v5 = vmul.f32 %v1221_v43, %v998_v42 }
 0x208   :  { %v1224_v49 = vadd.f32 %v1223_v5, %v1218_v53 }
 0x20a   :  { %v1230_v15 = vadd.f32 %v1229_v0, %v1224_v49 }
 0x215   :  { %v1177_v11 = vpop.f32.mrf.mxu3 }
 0x216   :  { %v1197_v33 = vpop.f32.mrf.mxu2 }
 0x217   :  { %v1198_v37 = vadd.f32 %v1197_v33, %v1177_v11 }
 0x219   :  { %v1253_v48 = vmul.f32 %v1251_v45, %v1198_v37 }
 0x224   :  { %v1077_v61 = vpop.f32.mrf.mxu1 }
 0x225   :  { %v1078_v56 = vadd.f32 %v1077_v61, %v1057_v1 }
 0x227   :  { %v1235_v14 = vmul.f32 %v1233_v60, %v1078_v56 }
 0x229   :  { %v1236_v9 = vadd.f32 %v1235_v14, %v1230_v15 }
 0x22b   :  { %v1242_v50 = vadd.f32 %v1241_v44, %v1236_v9 }
 0x244   :  { %v1157_v41 = vpop.f32.mrf.mxu1 }
 0x245   :  { %v1158_v58 = vadd.f32 %v1157_v41, %v1137_v36 }
 0x247   :  { %v1247_v59 = vmul.f32 %v1245_v28, %v1158_v58 }
 0x249   :  { %v1248_v55 = vadd.f32 %v1247_v59, %v1242_v50 }
 0x24b   :  { %v1254_v23 = vadd.f32 %v1253_v48, %v1248_v55 }
 0x24d   :  { %1280 = vmatpush.msrb.mxu0 %v1254_v23 }
 0x24e   :  { %1301 = vmatmul.msk.f32.vlgmr.msrb.gmra.mxu0 %vm763_vm0, %v1255_v51 }
 0x2cb   :  { %v1282_v2 = vpop.f32.mrf.mxu0 }
 0x2cc   :  { %v1283_v3 = vadd.f32 %v1282_v2, %v1260_v54 }
 0x2ce   :  { %v1285_v4 = vmax.f32 %v1283_v3, 0.0 }
 0x2d0   :  { %1287 = vrot.lane.b32.xlu1 %v1285_v4, %s1513_s11 }
 0x342   :  { %v1288_v8 = vpop.permute.xlu1 %1287 }
 0x343   :  { %v1291_v10 = vsel %vm1290_vm1, %v787_v7, %v1288_v8 }
 0x344   :  { %1292 = vst [vmem:[%s2312_s10] sm:$0xff] %v1291_v10 }
 0x345   :  { %1297 = vsyncpa [#allocation3], 1 }

</bundles_post_ra>
